<compile_context>
chip_gen: v7x
topology: tpu7x:2x2x1
jax: 0.10.0
libtpu: 0.0.40
codegen_flags: <defaults>
</compile_context>

<pallas_src>
import numpy as np

import jax
import jax.numpy as jnp
from jax.experimental import pallas as pl
from jax.experimental.pallas import tpu as pltpu

EPS = 1e-5

# (cin, cout, kernel, stride, pad) for the four conv blocks; input is 32x32.
CONV_CFG = [
    (2, 8, 5, 2, 2),
    (8, 16, 3, 2, 1),
    (16, 32, 3, 2, 1),
    (32, 64, 3, 2, 1),
]
H0 = W0 = 32


def _layer_dims():
  """Per layer: (H, OH, WC=W*Cin, OWC=OW*Cout, k, stride, pad); maps are square."""
  dims = []
  h = H0
  for (cin, cout, k, s, p) in CONV_CFG:
    oh = (h + 2 * p - k) // s + 1
    dims.append((h, oh, h * cin, oh * cout, k, s, p))
    h = oh
  return tuple(dims)


LAYER_DIMS = _layer_dims()


# ------------------------------ Pallas kernel ------------------------------ #

def _make_kernel(batch):
  """Build the fused forward kernel for a given (static) batch size."""

  def kernel(x_ref, w1_ref, aff1_ref, w2_ref, aff2_ref, w3_ref, aff3_ref,
             w4_ref, aff4_ref, wlin_ref, blin_ref, o_ref,
             g1_ref, act2_ref, g2_ref, act3_ref, g3_ref, act4_ref, g4_ref):
    w_refs = (w1_ref, w2_ref, w3_ref, w4_ref)
    aff_refs = (aff1_ref, aff2_ref, aff3_ref, aff4_ref)
    g_refs = (g1_ref, g2_ref, g3_ref, g4_ref)
    src_refs = (x_ref, act2_ref, act3_ref, act4_ref)
    dst_refs = (act2_ref, act3_ref, act4_ref, None)

    res = None
    for li in range(4):
      h, oh, wc, owc, k, stride, pad = LAYER_DIMS[li]
      src, g = src_refs[li], g_refs[li]

      # im2col along the kernel-row axis: tap i -> lane block [i*wc, (i+1)*wc).
      # H-axis stride/padding is a strided sublane gather; out-of-range rows
      # (top/bottom padding) are zeroed explicitly (few 1-row stores).
      for i in range(k):
        d = i - pad
        oy_lo = max(0, (-d + stride - 1) // stride)
        oy_hi = min(oh - 1, (h - 1 - d) // stride)
        cnt = oy_hi - oy_lo + 1
        h_start = stride * oy_lo + d
        for b in range(batch):
          if oy_lo > 0:
            g[b * oh:b * oh + oy_lo, i * wc:(i + 1) * wc] = jnp.zeros(
                (oy_lo, wc), jnp.float32)
          if oy_hi < oh - 1:
            g[b * oh + oy_hi + 1:(b + 1) * oh, i * wc:(i + 1) * wc] = jnp.zeros(
                (oh - 1 - oy_hi, wc), jnp.float32)
          start = b * h + h_start
          if cnt == 1:
            val = src[start:start + 1, :]
          else:
            val = src[pl.ds(start, cnt, stride=stride), :]
          g[b * oh + oy_lo:b * oh + oy_lo + cnt, i * wc:(i + 1) * wc] = val

      # One MXU matmul per layer (bf16 operands, f32 accumulation).
      acc = jnp.dot(g[...].astype(jnp.bfloat16), w_refs[li][...],
                    preferred_element_type=jnp.float32)

      # Conv -> ReLU -> BatchNorm(eval).  BN scale is pre-folded into the
      # weight columns; aff = [conv_bias*scale ; shift].
      aff = aff_refs[li][...]
      res = jnp.maximum(acc + aff[0:1, :], 0.0) + aff[1:2, :]
      if dst_refs[li] is not None:
        dst_refs[li][...] = res

    # Head: AdaptiveAvgPool2d(1) + Linear.  Per-sample oy reduction is a plain
    # row sum (no matmul); ox sum + 1/(OH*OW) are folded into wlin.
    oh4 = LAYER_DIMS[3][1]
    rows = [jnp.sum(res[b * oh4:(b + 1) * oh4, :], axis=0, keepdims=True)
            for b in range(batch)]
    pooled = jnp.concatenate(rows, axis=0)               # (batch, OW4*C4)
    o_ref[...] = (jnp.dot(pooled.astype(jnp.bfloat16), wlin_ref[...],
                          preferred_element_type=jnp.float32) + blin_ref[...])

  return kernel


# ------------------------------ parameters --------------------------------- #

def _kaiming_conv(key, k, cin, cout, a=0.1):
  """kaiming_normal_(a=0.1, mode='fan_in', leaky_relu); stored (kh, kw, cin, cout)."""
  fan_in = cin * k * k
  gain = (2.0 / (1.0 + a * a)) ** 0.5
  std = gain / (fan_in ** 0.5)
  w = jax.random.normal(key, (k, k, cin, cout), dtype=jnp.float32) * std
  return np.asarray(jax.device_get(w))


def init_params(key):
  """Batch-independent constants: per layer [wstack(bf16), aff(f32)], then head."""
  keys = jax.random.split(key, 6)
  params = []
  h = H0
  for idx, (cin, cout, k, stride, pad) in enumerate(CONV_CFG):
    wt = _kaiming_conv(keys[idx], k, cin, cout)            # (kh, kw, cin, cout)
    oh = (h + 2 * pad - k) // stride + 1
    ow = oh
    w = h
    wc = w * cin

    # Stacked Toeplitz weight: rows = (tap i, w_in, cin), cols = (ox, cout).
    # W-axis taps, channel mixing, W-stride and W-padding baked in; the H-axis
    # tap i just selects the row block [i*wc, (i+1)*wc) of the gathered input.
    wstack = np.zeros((k * wc, ow * cout), np.float32)
    for i in range(k):
      for ox in range(ow):
        for j in range(k):
          w_in = stride * ox + j - pad
          if 0 <= w_in < w:
            wstack[i * wc + w_in * cin:i * wc + (w_in + 1) * cin,
                   ox * cout:(ox + 1) * cout] += wt[i, j]

    # Eval-mode BN (fresh running stats) folded: scale into the weight columns
    # (valid since ReLU commutes with a positive scale); bias*scale and shift
    # kept as a (2, ow*cout) affine applied around the ReLU.
    bias = np.zeros((cout,), np.float32)           # conv bias zeroed in __init__
    gamma = np.ones((cout,), np.float32)
    beta = np.zeros((cout,), np.float32)
    mean = np.zeros((cout,), np.float32)
    var = np.ones((cout,), np.float32)
    scale = gamma / np.sqrt(var + EPS)
    shift = beta - mean * scale
    wstack *= np.tile(scale, ow)[None, :]
    aff = np.stack([np.tile(bias * scale, ow), np.tile(shift, ow)],
                   axis=0).astype(np.float32)      # (2, ow*cout) == (2, 128)

    params += [jnp.asarray(wstack, dtype=jnp.bfloat16), jnp.asarray(aff)]
    h = oh

  # Head: Linear(64 -> 2), PyTorch default uniform(-1/sqrt(in), 1/sqrt(in)).
  bound = 1.0 / (64.0 ** 0.5)
  lw = jax.random.uniform(keys[4], (64, 2), jnp.float32, -bound, bound)
  lb = jax.random.uniform(keys[5], (1, 2), jnp.float32, -bound, bound)
  ow4 = h
  # Fold the ox lane-block layout and the 1/(OH*OW) mean-pool factor into lw.
  wlin_exp = (jnp.tile(lw, (ow4, 1)) / float(ow4 * ow4)).astype(jnp.bfloat16)
  params += [wlin_exp, lb]
  return tuple(params)                              # pytree of arrays only


# -------------------------------- wrapper ----------------------------------- #

@jax.jit
def drone_classifier_forward(x_nchw, params):
  """x_nchw: (N, 2, 32, 32) NCHW.  Batch size is free (kernel specialized per N)."""
  n, cin, h, w = x_nchw.shape
  assert (cin, h, w) == (CONV_CFG[0][0], H0, W0), (cin, h, w)
  # Single cheap layout op: NCHW -> NHWC -> (N*H, W*Cin) matrix form.
  a0 = jnp.transpose(x_nchw, (0, 2, 3, 1)).reshape(n * h, w * cin).astype(jnp.float32)
  inputs = (a0,) + tuple(params)

  # Scratch: per layer a gather buffer (N*OH, k*W*Cin) and, for layers 1-3, an
  # activation buffer (N*OH, OW*Cout) feeding the next layer's gather.
  scratch_shapes = []
  for (hh, oh, wc, owc, k, _, _) in LAYER_DIMS:
    scratch_shapes.append(pltpu.VMEM((n * oh, k * wc), jnp.float32))
    scratch_shapes.append(pltpu.VMEM((n * oh, owc), jnp.float32))
  scratch_shapes = scratch_shapes[:-1]   # layer-4 output is consumed as a value

  vmem = pltpu.MemorySpace.VMEM
  return pl.pallas_call(
      _make_kernel(n),
      out_shape=jax.ShapeDtypeStruct((n, 2), jnp.float32),
      in_specs=[pl.BlockSpec(memory_space=vmem) for _ in inputs],
      out_specs=pl.BlockSpec(memory_space=vmem),
      scratch_shapes=scratch_shapes,
  )(*inputs)


# ---------------------------------- main ------------------------------------ #

if __name__ == "__main__":
  key = jax.random.PRNGKey(0)
  pkey, xkey = jax.random.split(key)
  params = init_params(pkey)
  # Input consistent with the module: (batch=2, channels=2, H=32, W=32), NCHW.
  x = jax.random.normal(xkey, (2, 2, 32, 32), dtype=jnp.float32)
  out = drone_classifier_forward(x, params)
  out = jax.block_until_ready(out)
  assert out.shape == (2, 2), out.shape
  assert bool(jnp.all(jnp.isfinite(out))), "non-finite output"
  print("KERNEL_OK")
</pallas_src>

<mosaic_0001>
module attributes {stable_mosaic.version = 11 : i64} {
  func.func @kernel(%arg0: memref<64x64xf32, #tpu.memory_space<vmem>>, %arg1: memref<320x128xbf16, #tpu.memory_space<vmem>>, %arg2: memref<2x128xf32, #tpu.memory_space<vmem>>, %arg3: memref<384x128xbf16, #tpu.memory_space<vmem>>, %arg4: memref<2x128xf32, #tpu.memory_space<vmem>>, %arg5: memref<384x128xbf16, #tpu.memory_space<vmem>>, %arg6: memref<2x128xf32, #tpu.memory_space<vmem>>, %arg7: memref<384x128xbf16, #tpu.memory_space<vmem>>, %arg8: memref<2x128xf32, #tpu.memory_space<vmem>>, %arg9: memref<128x2xbf16, #tpu.memory_space<vmem>>, %arg10: memref<1x2xf32, #tpu.memory_space<vmem>>, %arg11: memref<2x2xf32, #tpu.memory_space<vmem>>, %arg12: memref<32x320xf32, #tpu.memory_space<vmem>>, %arg13: memref<32x128xf32, #tpu.memory_space<vmem>>, %arg14: memref<16x384xf32, #tpu.memory_space<vmem>>, %arg15: memref<16x128xf32, #tpu.memory_space<vmem>>, %arg16: memref<8x384xf32, #tpu.memory_space<vmem>>, %arg17: memref<8x128xf32, #tpu.memory_space<vmem>>, %arg18: memref<4x384xf32, #tpu.memory_space<vmem>>) attributes {dimension_semantics = [], scalar_prefetch = 0 : i64, scratch_operands = 7 : i64, tpu.core_type = #tpu.core_type<tc>} {
    %cst = arith.constant 0.000000e+00 : f32
    %0 = vector.broadcast %cst : f32 to vector<1x64xf32>
    %c0 = arith.constant 0 : index
    %c0_0 = arith.constant 0 : index
    %1 = vector.load %arg12[%c0, %c0_0] : memref<32x320xf32, #tpu.memory_space<vmem>>, vector<1x64xf32>
    tpu.vector_store %arg12[%c0, %c0_0], %0 {strides = array<i32>} : memref<32x320xf32, #tpu.memory_space<vmem>>, vector<1x64xf32>,
    %c0_1 = arith.constant 0 : index
    %c0_2 = arith.constant 0 : index
    %2 = tpu.strided_load %arg0[%c0_1, %c0_2] {strides = array<i32: 2, 1>} : memref<64x64xf32, #tpu.memory_space<vmem>>, vector<15x64xf32>
    %c1 = arith.constant 1 : index
    %c0_3 = arith.constant 0 : index
    %3 = vector.load %arg12[%c1, %c0_3] : memref<32x320xf32, #tpu.memory_space<vmem>>, vector<15x64xf32>
    tpu.vector_store %arg12[%c1, %c0_3], %2 {strides = array<i32>} : memref<32x320xf32, #tpu.memory_space<vmem>>, vector<15x64xf32>,
    %cst_4 = arith.constant 0.000000e+00 : f32
    %4 = vector.broadcast %cst_4 : f32 to vector<1x64xf32>
    %c16 = arith.constant 16 : index
    %c0_5 = arith.constant 0 : index
    %5 = vector.load %arg12[%c16, %c0_5] : memref<32x320xf32, #tpu.memory_space<vmem>>, vector<1x64xf32>
    tpu.vector_store %arg12[%c16, %c0_5], %4 {strides = array<i32>} : memref<32x320xf32, #tpu.memory_space<vmem>>, vector<1x64xf32>,
    %c32 = arith.constant 32 : index
    %c0_6 = arith.constant 0 : index
    %6 = tpu.strided_load %arg0[%c32, %c0_6] {strides = array<i32: 2, 1>} : memref<64x64xf32, #tpu.memory_space<vmem>>, vector<15x64xf32>
    %c17 = arith.constant 17 : index
    %c0_7 = arith.constant 0 : index
    %7 = vector.load %arg12[%c17, %c0_7] : memref<32x320xf32, #tpu.memory_space<vmem>>, vector<15x64xf32>
    tpu.vector_store %arg12[%c17, %c0_7], %6 {strides = array<i32>} : memref<32x320xf32, #tpu.memory_space<vmem>>, vector<15x64xf32>,
    %cst_8 = arith.constant 0.000000e+00 : f32
    %8 = vector.broadcast %cst_8 : f32 to vector<1x64xf32>
    %c0_9 = arith.constant 0 : index
    %c64 = arith.constant 64 : index
    %9 = vector.load %arg12[%c0_9, %c64] : memref<32x320xf32, #tpu.memory_space<vmem>>, vector<1x64xf32>
    tpu.vector_store %arg12[%c0_9, %c64], %8 {strides = array<i32>} : memref<32x320xf32, #tpu.memory_space<vmem>>, vector<1x64xf32>,
    %c1_10 = arith.constant 1 : index
    %c0_11 = arith.constant 0 : index
    %10 = tpu.strided_load %arg0[%c1_10, %c0_11] {strides = array<i32: 2, 1>} : memref<64x64xf32, #tpu.memory_space<vmem>>, vector<15x64xf32>
    %c1_12 = arith.constant 1 : index
    %c64_13 = arith.constant 64 : index
    %11 = vector.load %arg12[%c1_12, %c64_13] : memref<32x320xf32, #tpu.memory_space<vmem>>, vector<15x64xf32>
    tpu.vector_store %arg12[%c1_12, %c64_13], %10 {strides = array<i32>} : memref<32x320xf32, #tpu.memory_space<vmem>>, vector<15x64xf32>,
    %cst_14 = arith.constant 0.000000e+00 : f32
    %12 = vector.broadcast %cst_14 : f32 to vector<1x64xf32>
    %c16_15 = arith.constant 16 : index
    %c64_16 = arith.constant 64 : index
    %13 = vector.load %arg12[%c16_15, %c64_16] : memref<32x320xf32, #tpu.memory_space<vmem>>, vector<1x64xf32>
    tpu.vector_store %arg12[%c16_15, %c64_16], %12 {strides = array<i32>} : memref<32x320xf32, #tpu.memory_space<vmem>>, vector<1x64xf32>,
    %c33 = arith.constant 33 : index
    %c0_17 = arith.constant 0 : index
    %14 = tpu.strided_load %arg0[%c33, %c0_17] {strides = array<i32: 2, 1>} : memref<64x64xf32, #tpu.memory_space<vmem>>, vector<15x64xf32>
    %c17_18 = arith.constant 17 : index
    %c64_19 = arith.constant 64 : index
    %15 = vector.load %arg12[%c17_18, %c64_19] : memref<32x320xf32, #tpu.memory_space<vmem>>, vector<15x64xf32>
    tpu.vector_store %arg12[%c17_18, %c64_19], %14 {strides = array<i32>} : memref<32x320xf32, #tpu.memory_space<vmem>>, vector<15x64xf32>,
    %c0_20 = arith.constant 0 : index
    %c0_21 = arith.constant 0 : index
    %16 = tpu.strided_load %arg0[%c0_20, %c0_21] {strides = array<i32: 2, 1>} : memref<64x64xf32, #tpu.memory_space<vmem>>, vector<16x64xf32>
    %c0_22 = arith.constant 0 : index
    %c128 = arith.constant 128 : index
    %17 = vector.load %arg12[%c0_22, %c128] : memref<32x320xf32, #tpu.memory_space<vmem>>, vector<16x64xf32>
    tpu.vector_store %arg12[%c0_22, %c128], %16 {strides = array<i32>} : memref<32x320xf32, #tpu.memory_space<vmem>>, vector<16x64xf32>,
    %c32_23 = arith.constant 32 : index
    %c0_24 = arith.constant 0 : index
    %18 = tpu.strided_load %arg0[%c32_23, %c0_24] {strides = array<i32: 2, 1>} : memref<64x64xf32, #tpu.memory_space<vmem>>, vector<16x64xf32>
    %c16_25 = arith.constant 16 : index
    %c128_26 = arith.constant 128 : index
    %19 = vector.load %arg12[%c16_25, %c128_26] : memref<32x320xf32, #tpu.memory_space<vmem>>, vector<16x64xf32>
    tpu.vector_store %arg12[%c16_25, %c128_26], %18 {strides = array<i32>} : memref<32x320xf32, #tpu.memory_space<vmem>>, vector<16x64xf32>,
    %c1_27 = arith.constant 1 : index
    %c0_28 = arith.constant 0 : index
    %20 = tpu.strided_load %arg0[%c1_27, %c0_28] {strides = array<i32: 2, 1>} : memref<64x64xf32, #tpu.memory_space<vmem>>, vector<16x64xf32>
    %c0_29 = arith.constant 0 : index
    %c192 = arith.constant 192 : index
    %21 = vector.load %arg12[%c0_29, %c192] : memref<32x320xf32, #tpu.memory_space<vmem>>, vector<16x64xf32>
    tpu.vector_store %arg12[%c0_29, %c192], %20 {strides = array<i32>} : memref<32x320xf32, #tpu.memory_space<vmem>>, vector<16x64xf32>,
    %c33_30 = arith.constant 33 : index
    %c0_31 = arith.constant 0 : index
    %22 = tpu.strided_load %arg0[%c33_30, %c0_31] {strides = array<i32: 2, 1>} : memref<64x64xf32, #tpu.memory_space<vmem>>, vector<16x64xf32>
    %c16_32 = arith.constant 16 : index
    %c192_33 = arith.constant 192 : index
    %23 = vector.load %arg12[%c16_32, %c192_33] : memref<32x320xf32, #tpu.memory_space<vmem>>, vector<16x64xf32>
    tpu.vector_store %arg12[%c16_32, %c192_33], %22 {strides = array<i32>} : memref<32x320xf32, #tpu.memory_space<vmem>>, vector<16x64xf32>,
    %cst_34 = arith.constant 0.000000e+00 : f32
    %24 = vector.broadcast %cst_34 : f32 to vector<1x64xf32>
    %c15 = arith.constant 15 : index
    %c256 = arith.constant 256 : index
    %25 = vector.load %arg12[%c15, %c256] : memref<32x320xf32, #tpu.memory_space<vmem>>, vector<1x64xf32>
    tpu.vector_store %arg12[%c15, %c256], %24 {strides = array<i32>} : memref<32x320xf32, #tpu.memory_space<vmem>>, vector<1x64xf32>,
    %c2 = arith.constant 2 : index
    %c0_35 = arith.constant 0 : index
    %26 = tpu.strided_load %arg0[%c2, %c0_35] {strides = array<i32: 2, 1>} : memref<64x64xf32, #tpu.memory_space<vmem>>, vector<15x64xf32>
    %c0_36 = arith.constant 0 : index
    %c256_37 = arith.constant 256 : index
    %27 = vector.load %arg12[%c0_36, %c256_37] : memref<32x320xf32, #tpu.memory_space<vmem>>, vector<15x64xf32>
    tpu.vector_store %arg12[%c0_36, %c256_37], %26 {strides = array<i32>} : memref<32x320xf32, #tpu.memory_space<vmem>>, vector<15x64xf32>,
    %cst_38 = arith.constant 0.000000e+00 : f32
    %28 = vector.broadcast %cst_38 : f32 to vector<1x64xf32>
    %c31 = arith.constant 31 : index
    %c256_39 = arith.constant 256 : index
    %29 = vector.load %arg12[%c31, %c256_39] : memref<32x320xf32, #tpu.memory_space<vmem>>, vector<1x64xf32>
    tpu.vector_store %arg12[%c31, %c256_39], %28 {strides = array<i32>} : memref<32x320xf32, #tpu.memory_space<vmem>>, vector<1x64xf32>,
    %c34 = arith.constant 34 : index
    %c0_40 = arith.constant 0 : index
    %30 = tpu.strided_load %arg0[%c34, %c0_40] {strides = array<i32: 2, 1>} : memref<64x64xf32, #tpu.memory_space<vmem>>, vector<15x64xf32>
    %c16_41 = arith.constant 16 : index
    %c256_42 = arith.constant 256 : index
    %31 = vector.load %arg12[%c16_41, %c256_42] : memref<32x320xf32, #tpu.memory_space<vmem>>, vector<15x64xf32>
    tpu.vector_store %arg12[%c16_41, %c256_42], %30 {strides = array<i32>} : memref<32x320xf32, #tpu.memory_space<vmem>>, vector<15x64xf32>,
    %c0_43 = arith.constant 0 : index
    %c0_44 = arith.constant 0 : index
    %32 = vector.load %arg12[%c0_43, %c0_44] : memref<32x320xf32, #tpu.memory_space<vmem>>, vector<32x320xf32>
    %33 = arith.truncf %32 : vector<32x320xf32> to vector<32x320xbf16>
    %c0_45 = arith.constant 0 : index
    %c0_46 = arith.constant 0 : index
    %34 = vector.load %arg1[%c0_45, %c0_46] : memref<320x128xbf16, #tpu.memory_space<vmem>>, vector<320x128xbf16>
    %cst_47 = arith.constant dense<0.000000e+00> : vector<32x128xf32>
    %35 = tpu.matmul %33, %34, %cst_47 {dimension_numbers = #tpu.dot_dimension_numbers<[1], [0], [0], [1], [0, 0, 1, 1], [], []>} : vector<32x320xbf16>, vector<320x128xbf16>, vector<32x128xf32> -> vector<32x128xf32>
    %c0_48 = arith.constant 0 : index
    %c0_49 = arith.constant 0 : index
    %36 = vector.load %arg2[%c0_48, %c0_49] : memref<2x128xf32, #tpu.memory_space<vmem>>, vector<2x128xf32>
    %37 = vector.extract_strided_slice %36 {offsets = [0, 0], sizes = [1, 128], strides = [1, 1]} : vector<2x128xf32> to vector<1x128xf32>
    %38 = vector.broadcast %37 : vector<1x128xf32> to vector<32x128xf32>
    %39 = arith.addf %35, %38 : vector<32x128xf32>
    %cst_50 = arith.constant 0.000000e+00 : f32
    %40 = vector.broadcast %cst_50 : f32 to vector<32x128xf32>
    %41 = arith.maximumf %39, %40 : vector<32x128xf32>
    %42 = vector.extract_strided_slice %36 {offsets = [1, 0], sizes = [1, 128], strides = [1, 1]} : vector<2x128xf32> to vector<1x128xf32>
    %43 = vector.broadcast %42 : vector<1x128xf32> to vector<32x128xf32>
    %44 = arith.addf %41, %43 : vector<32x128xf32>
    %c0_51 = arith.constant 0 : index
    %c0_52 = arith.constant 0 : index
    %45 = vector.load %arg13[%c0_51, %c0_52] : memref<32x128xf32, #tpu.memory_space<vmem>>, vector<32x128xf32>
    tpu.vector_store %arg13[%c0_51, %c0_52], %44 {strides = array<i32>} : memref<32x128xf32, #tpu.memory_space<vmem>>, vector<32x128xf32>,
    %cst_53 = arith.constant 0.000000e+00 : f32
    %46 = vector.broadcast %cst_53 : f32 to vector<1x128xf32>
    %c0_54 = arith.constant 0 : index
    %c0_55 = arith.constant 0 : index
    %47 = vector.load %arg14[%c0_54, %c0_55] : memref<16x384xf32, #tpu.memory_space<vmem>>, vector<1x128xf32>
    tpu.vector_store %arg14[%c0_54, %c0_55], %46 {strides = array<i32>} : memref<16x384xf32, #tpu.memory_space<vmem>>, vector<1x128xf32>,
    %c1_56 = arith.constant 1 : index
    %c0_57 = arith.constant 0 : index
    %48 = tpu.strided_load %arg13[%c1_56, %c0_57] {strides = array<i32: 2, 1>} : memref<32x128xf32, #tpu.memory_space<vmem>>, vector<7x128xf32>
    %c1_58 = arith.constant 1 : index
    %c0_59 = arith.constant 0 : index
    %49 = vector.load %arg14[%c1_58, %c0_59] : memref<16x384xf32, #tpu.memory_space<vmem>>, vector<7x128xf32>
    tpu.vector_store %arg14[%c1_58, %c0_59], %48 {strides = array<i32>} : memref<16x384xf32, #tpu.memory_space<vmem>>, vector<7x128xf32>,
    %cst_60 = arith.constant 0.000000e+00 : f32
    %50 = vector.broadcast %cst_60 : f32 to vector<1x128xf32>
    %c8 = arith.constant 8 : index
    %c0_61 = arith.constant 0 : index
    %51 = vector.load %arg14[%c8, %c0_61] : memref<16x384xf32, #tpu.memory_space<vmem>>, vector<1x128xf32>
    tpu.vector_store %arg14[%c8, %c0_61], %50 {strides = array<i32>} : memref<16x384xf32, #tpu.memory_space<vmem>>, vector<1x128xf32>,
    %c17_62 = arith.constant 17 : index
    %c0_63 = arith.constant 0 : index
    %52 = tpu.strided_load %arg13[%c17_62, %c0_63] {strides = array<i32: 2, 1>} : memref<32x128xf32, #tpu.memory_space<vmem>>, vector<7x128xf32>
    %c9 = arith.constant 9 : index
    %c0_64 = arith.constant 0 : index
    %53 = vector.load %arg14[%c9, %c0_64] : memref<16x384xf32, #tpu.memory_space<vmem>>, vector<7x128xf32>
    tpu.vector_store %arg14[%c9, %c0_64], %52 {strides = array<i32>} : memref<16x384xf32, #tpu.memory_space<vmem>>, vector<7x128xf32>,
    %c0_65 = arith.constant 0 : index
    %c0_66 = arith.constant 0 : index
    %54 = tpu.strided_load %arg13[%c0_65, %c0_66] {strides = array<i32: 2, 1>} : memref<32x128xf32, #tpu.memory_space<vmem>>, vector<8x128xf32>
    %c0_67 = arith.constant 0 : index
    %c128_68 = arith.constant 128 : index
    %55 = vector.load %arg14[%c0_67, %c128_68] : memref<16x384xf32, #tpu.memory_space<vmem>>, vector<8x128xf32>
    tpu.vector_store %arg14[%c0_67, %c128_68], %54 {strides = array<i32>} : memref<16x384xf32, #tpu.memory_space<vmem>>, vector<8x128xf32>,
    %c16_69 = arith.constant 16 : index
    %c0_70 = arith.constant 0 : index
    %56 = tpu.strided_load %arg13[%c16_69, %c0_70] {strides = array<i32: 2, 1>} : memref<32x128xf32, #tpu.memory_space<vmem>>, vector<8x128xf32>
    %c8_71 = arith.constant 8 : index
    %c128_72 = arith.constant 128 : index
    %57 = vector.load %arg14[%c8_71, %c128_72] : memref<16x384xf32, #tpu.memory_space<vmem>>, vector<8x128xf32>
    tpu.vector_store %arg14[%c8_71, %c128_72], %56 {strides = array<i32>} : memref<16x384xf32, #tpu.memory_space<vmem>>, vector<8x128xf32>,
    %c1_73 = arith.constant 1 : index
    %c0_74 = arith.constant 0 : index
    %58 = tpu.strided_load %arg13[%c1_73, %c0_74] {strides = array<i32: 2, 1>} : memref<32x128xf32, #tpu.memory_space<vmem>>, vector<8x128xf32>
    %c0_75 = arith.constant 0 : index
    %c256_76 = arith.constant 256 : index
    %59 = vector.load %arg14[%c0_75, %c256_76] : memref<16x384xf32, #tpu.memory_space<vmem>>, vector<8x128xf32>
    tpu.vector_store %arg14[%c0_75, %c256_76], %58 {strides = array<i32>} : memref<16x384xf32, #tpu.memory_space<vmem>>, vector<8x128xf32>,
    %c17_77 = arith.constant 17 : index
    %c0_78 = arith.constant 0 : index
    %60 = tpu.strided_load %arg13[%c17_77, %c0_78] {strides = array<i32: 2, 1>} : memref<32x128xf32, #tpu.memory_space<vmem>>, vector<8x128xf32>
    %c8_79 = arith.constant 8 : index
    %c256_80 = arith.constant 256 : index
    %61 = vector.load %arg14[%c8_79, %c256_80] : memref<16x384xf32, #tpu.memory_space<vmem>>, vector<8x128xf32>
    tpu.vector_store %arg14[%c8_79, %c256_80], %60 {strides = array<i32>} : memref<16x384xf32, #tpu.memory_space<vmem>>, vector<8x128xf32>,
    %c0_81 = arith.constant 0 : index
    %c0_82 = arith.constant 0 : index
    %62 = vector.load %arg14[%c0_81, %c0_82] : memref<16x384xf32, #tpu.memory_space<vmem>>, vector<16x384xf32>
    %63 = arith.truncf %62 : vector<16x384xf32> to vector<16x384xbf16>
    %c0_83 = arith.constant 0 : index
    %c0_84 = arith.constant 0 : index
    %64 = vector.load %arg3[%c0_83, %c0_84] : memref<384x128xbf16, #tpu.memory_space<vmem>>, vector<384x128xbf16>
    %cst_85 = arith.constant dense<0.000000e+00> : vector<16x128xf32>
    %65 = tpu.matmul %63, %64, %cst_85 {dimension_numbers = #tpu.dot_dimension_numbers<[1], [0], [0], [1], [0, 0, 1, 1], [], []>} : vector<16x384xbf16>, vector<384x128xbf16>, vector<16x128xf32> -> vector<16x128xf32>
    %c0_86 = arith.constant 0 : index
    %c0_87 = arith.constant 0 : index
    %66 = vector.load %arg4[%c0_86, %c0_87] : memref<2x128xf32, #tpu.memory_space<vmem>>, vector<2x128xf32>
    %67 = vector.extract_strided_slice %66 {offsets = [0, 0], sizes = [1, 128], strides = [1, 1]} : vector<2x128xf32> to vector<1x128xf32>
    %68 = vector.broadcast %67 : vector<1x128xf32> to vector<16x128xf32>
    %69 = arith.addf %65, %68 : vector<16x128xf32>
    %cst_88 = arith.constant 0.000000e+00 : f32
    %70 = vector.broadcast %cst_88 : f32 to vector<16x128xf32>
    %71 = arith.maximumf %69, %70 : vector<16x128xf32>
    %72 = vector.extract_strided_slice %66 {offsets = [1, 0], sizes = [1, 128], strides = [1, 1]} : vector<2x128xf32> to vector<1x128xf32>
    %73 = vector.broadcast %72 : vector<1x128xf32> to vector<16x128xf32>
    %74 = arith.addf %71, %73 : vector<16x128xf32>
    %c0_89 = arith.constant 0 : index
    %c0_90 = arith.constant 0 : index
    %75 = vector.load %arg15[%c0_89, %c0_90] : memref<16x128xf32, #tpu.memory_space<vmem>>, vector<16x128xf32>
    tpu.vector_store %arg15[%c0_89, %c0_90], %74 {strides = array<i32>} : memref<16x128xf32, #tpu.memory_space<vmem>>, vector<16x128xf32>,
    %cst_91 = arith.constant 0.000000e+00 : f32
    %76 = vector.broadcast %cst_91 : f32 to vector<1x128xf32>
    %c0_92 = arith.constant 0 : index
    %c0_93 = arith.constant 0 : index
    %77 = vector.load %arg16[%c0_92, %c0_93] : memref<8x384xf32, #tpu.memory_space<vmem>>, vector<1x128xf32>
    tpu.vector_store %arg16[%c0_92, %c0_93], %76 {strides = array<i32>} : memref<8x384xf32, #tpu.memory_space<vmem>>, vector<1x128xf32>,
    %c1_94 = arith.constant 1 : index
    %c0_95 = arith.constant 0 : index
    %78 = tpu.strided_load %arg15[%c1_94, %c0_95] {strides = array<i32: 2, 1>} : memref<16x128xf32, #tpu.memory_space<vmem>>, vector<3x128xf32>
    %c1_96 = arith.constant 1 : index
    %c0_97 = arith.constant 0 : index
    %79 = vector.load %arg16[%c1_96, %c0_97] : memref<8x384xf32, #tpu.memory_space<vmem>>, vector<3x128xf32>
    tpu.vector_store %arg16[%c1_96, %c0_97], %78 {strides = array<i32>} : memref<8x384xf32, #tpu.memory_space<vmem>>, vector<3x128xf32>,
    %cst_98 = arith.constant 0.000000e+00 : f32
    %80 = vector.broadcast %cst_98 : f32 to vector<1x128xf32>
    %c4 = arith.constant 4 : index
    %c0_99 = arith.constant 0 : index
    %81 = vector.load %arg16[%c4, %c0_99] : memref<8x384xf32, #tpu.memory_space<vmem>>, vector<1x128xf32>
    tpu.vector_store %arg16[%c4, %c0_99], %80 {strides = array<i32>} : memref<8x384xf32, #tpu.memory_space<vmem>>, vector<1x128xf32>,
    %c9_100 = arith.constant 9 : index
    %c0_101 = arith.constant 0 : index
    %82 = tpu.strided_load %arg15[%c9_100, %c0_101] {strides = array<i32: 2, 1>} : memref<16x128xf32, #tpu.memory_space<vmem>>, vector<3x128xf32>
    %c5 = arith.constant 5 : index
    %c0_102 = arith.constant 0 : index
    %83 = vector.load %arg16[%c5, %c0_102] : memref<8x384xf32, #tpu.memory_space<vmem>>, vector<3x128xf32>
    tpu.vector_store %arg16[%c5, %c0_102], %82 {strides = array<i32>} : memref<8x384xf32, #tpu.memory_space<vmem>>, vector<3x128xf32>,
    %c0_103 = arith.constant 0 : index
    %c0_104 = arith.constant 0 : index
    %84 = tpu.strided_load %arg15[%c0_103, %c0_104] {strides = array<i32: 2, 1>} : memref<16x128xf32, #tpu.memory_space<vmem>>, vector<4x128xf32>
    %c0_105 = arith.constant 0 : index
    %c128_106 = arith.constant 128 : index
    %85 = vector.load %arg16[%c0_105, %c128_106] : memref<8x384xf32, #tpu.memory_space<vmem>>, vector<4x128xf32>
    tpu.vector_store %arg16[%c0_105, %c128_106], %84 {strides = array<i32>} : memref<8x384xf32, #tpu.memory_space<vmem>>, vector<4x128xf32>,
    %c8_107 = arith.constant 8 : index
    %c0_108 = arith.constant 0 : index
    %86 = tpu.strided_load %arg15[%c8_107, %c0_108] {strides = array<i32: 2, 1>} : memref<16x128xf32, #tpu.memory_space<vmem>>, vector<4x128xf32>
    %c4_109 = arith.constant 4 : index
    %c128_110 = arith.constant 128 : index
    %87 = vector.load %arg16[%c4_109, %c128_110] : memref<8x384xf32, #tpu.memory_space<vmem>>, vector<4x128xf32>
    tpu.vector_store %arg16[%c4_109, %c128_110], %86 {strides = array<i32>} : memref<8x384xf32, #tpu.memory_space<vmem>>, vector<4x128xf32>,
    %c1_111 = arith.constant 1 : index
    %c0_112 = arith.constant 0 : index
    %88 = tpu.strided_load %arg15[%c1_111, %c0_112] {strides = array<i32: 2, 1>} : memref<16x128xf32, #tpu.memory_space<vmem>>, vector<4x128xf32>
    %c0_113 = arith.constant 0 : index
    %c256_114 = arith.constant 256 : index
    %89 = vector.load %arg16[%c0_113, %c256_114] : memref<8x384xf32, #tpu.memory_space<vmem>>, vector<4x128xf32>
    tpu.vector_store %arg16[%c0_113, %c256_114], %88 {strides = array<i32>} : memref<8x384xf32, #tpu.memory_space<vmem>>, vector<4x128xf32>,
    %c9_115 = arith.constant 9 : index
    %c0_116 = arith.constant 0 : index
    %90 = tpu.strided_load %arg15[%c9_115, %c0_116] {strides = array<i32: 2, 1>} : memref<16x128xf32, #tpu.memory_space<vmem>>, vector<4x128xf32>
    %c4_117 = arith.constant 4 : index
    %c256_118 = arith.constant 256 : index
    %91 = vector.load %arg16[%c4_117, %c256_118] : memref<8x384xf32, #tpu.memory_space<vmem>>, vector<4x128xf32>
    tpu.vector_store %arg16[%c4_117, %c256_118], %90 {strides = array<i32>} : memref<8x384xf32, #tpu.memory_space<vmem>>, vector<4x128xf32>,
    %c0_119 = arith.constant 0 : index
    %c0_120 = arith.constant 0 : index
    %92 = vector.load %arg16[%c0_119, %c0_120] : memref<8x384xf32, #tpu.memory_space<vmem>>, vector<8x384xf32>
    %93 = arith.truncf %92 : vector<8x384xf32> to vector<8x384xbf16>
    %c0_121 = arith.constant 0 : index
    %c0_122 = arith.constant 0 : index
    %94 = vector.load %arg5[%c0_121, %c0_122] : memref<384x128xbf16, #tpu.memory_space<vmem>>, vector<384x128xbf16>
    %cst_123 = arith.constant dense<0.000000e+00> : vector<8x128xf32>
    %95 = tpu.matmul %93, %94, %cst_123 {dimension_numbers = #tpu.dot_dimension_numbers<[1], [0], [0], [1], [0, 0, 1, 1], [], []>} : vector<8x384xbf16>, vector<384x128xbf16>, vector<8x128xf32> -> vector<8x128xf32>
    %c0_124 = arith.constant 0 : index
    %c0_125 = arith.constant 0 : index
    %96 = vector.load %arg6[%c0_124, %c0_125] : memref<2x128xf32, #tpu.memory_space<vmem>>, vector<2x128xf32>
    %97 = vector.extract_strided_slice %96 {offsets = [0, 0], sizes = [1, 128], strides = [1, 1]} : vector<2x128xf32> to vector<1x128xf32>
    %98 = vector.broadcast %97 : vector<1x128xf32> to vector<8x128xf32>
    %99 = arith.addf %95, %98 : vector<8x128xf32>
    %cst_126 = arith.constant 0.000000e+00 : f32
    %100 = vector.broadcast %cst_126 : f32 to vector<8x128xf32>
    %101 = arith.maximumf %99, %100 : vector<8x128xf32>
    %102 = vector.extract_strided_slice %96 {offsets = [1, 0], sizes = [1, 128], strides = [1, 1]} : vector<2x128xf32> to vector<1x128xf32>
    %103 = vector.broadcast %102 : vector<1x128xf32> to vector<8x128xf32>
    %104 = arith.addf %101, %103 : vector<8x128xf32>
    %c0_127 = arith.constant 0 : index
    %c0_128 = arith.constant 0 : index
    %105 = vector.load %arg17[%c0_127, %c0_128] : memref<8x128xf32, #tpu.memory_space<vmem>>, vector<8x128xf32>
    tpu.vector_store %arg17[%c0_127, %c0_128], %104 {strides = array<i32>} : memref<8x128xf32, #tpu.memory_space<vmem>>, vector<8x128xf32>,
    %cst_129 = arith.constant 0.000000e+00 : f32
    %106 = vector.broadcast %cst_129 : f32 to vector<1x128xf32>
    %c0_130 = arith.constant 0 : index
    %c0_131 = arith.constant 0 : index
    %107 = vector.load %arg18[%c0_130, %c0_131] : memref<4x384xf32, #tpu.memory_space<vmem>>, vector<1x128xf32>
    tpu.vector_store %arg18[%c0_130, %c0_131], %106 {strides = array<i32>} : memref<4x384xf32, #tpu.memory_space<vmem>>, vector<1x128xf32>,
    %c1_132 = arith.constant 1 : index
    %c0_133 = arith.constant 0 : index
    %108 = vector.load %arg17[%c1_132, %c0_133] : memref<8x128xf32, #tpu.memory_space<vmem>>, vector<1x128xf32>
    %c1_134 = arith.constant 1 : index
    %c0_135 = arith.constant 0 : index
    %109 = vector.load %arg18[%c1_134, %c0_135] : memref<4x384xf32, #tpu.memory_space<vmem>>, vector<1x128xf32>
    tpu.vector_store %arg18[%c1_134, %c0_135], %108 {strides = array<i32>} : memref<4x384xf32, #tpu.memory_space<vmem>>, vector<1x128xf32>,
    %cst_136 = arith.constant 0.000000e+00 : f32
    %110 = vector.broadcast %cst_136 : f32 to vector<1x128xf32>
    %c2_137 = arith.constant 2 : index
    %c0_138 = arith.constant 0 : index
    %111 = vector.load %arg18[%c2_137, %c0_138] : memref<4x384xf32, #tpu.memory_space<vmem>>, vector<1x128xf32>
    tpu.vector_store %arg18[%c2_137, %c0_138], %110 {strides = array<i32>} : memref<4x384xf32, #tpu.memory_space<vmem>>, vector<1x128xf32>,
    %c5_139 = arith.constant 5 : index
    %c0_140 = arith.constant 0 : index
    %112 = vector.load %arg17[%c5_139, %c0_140] : memref<8x128xf32, #tpu.memory_space<vmem>>, vector<1x128xf32>
    %c3 = arith.constant 3 : index
    %c0_141 = arith.constant 0 : index
    %113 = vector.load %arg18[%c3, %c0_141] : memref<4x384xf32, #tpu.memory_space<vmem>>, vector<1x128xf32>
    tpu.vector_store %arg18[%c3, %c0_141], %112 {strides = array<i32>} : memref<4x384xf32, #tpu.memory_space<vmem>>, vector<1x128xf32>,
    %c0_142 = arith.constant 0 : index
    %c0_143 = arith.constant 0 : index
    %114 = tpu.strided_load %arg17[%c0_142, %c0_143] {strides = array<i32: 2, 1>} : memref<8x128xf32, #tpu.memory_space<vmem>>, vector<2x128xf32>
    %c0_144 = arith.constant 0 : index
    %c128_145 = arith.constant 128 : index
    %115 = vector.load %arg18[%c0_144, %c128_145] : memref<4x384xf32, #tpu.memory_space<vmem>>, vector<2x128xf32>
    tpu.vector_store %arg18[%c0_144, %c128_145], %114 {strides = array<i32>} : memref<4x384xf32, #tpu.memory_space<vmem>>, vector<2x128xf32>,
    %c4_146 = arith.constant 4 : index
    %c0_147 = arith.constant 0 : index
    %116 = tpu.strided_load %arg17[%c4_146, %c0_147] {strides = array<i32: 2, 1>} : memref<8x128xf32, #tpu.memory_space<vmem>>, vector<2x128xf32>
    %c2_148 = arith.constant 2 : index
    %c128_149 = arith.constant 128 : index
    %117 = vector.load %arg18[%c2_148, %c128_149] : memref<4x384xf32, #tpu.memory_space<vmem>>, vector<2x128xf32>
    tpu.vector_store %arg18[%c2_148, %c128_149], %116 {strides = array<i32>} : memref<4x384xf32, #tpu.memory_space<vmem>>, vector<2x128xf32>,
    %c1_150 = arith.constant 1 : index
    %c0_151 = arith.constant 0 : index
    %118 = tpu.strided_load %arg17[%c1_150, %c0_151] {strides = array<i32: 2, 1>} : memref<8x128xf32, #tpu.memory_space<vmem>>, vector<2x128xf32>
    %c0_152 = arith.constant 0 : index
    %c256_153 = arith.constant 256 : index
    %119 = vector.load %arg18[%c0_152, %c256_153] : memref<4x384xf32, #tpu.memory_space<vmem>>, vector<2x128xf32>
    tpu.vector_store %arg18[%c0_152, %c256_153], %118 {strides = array<i32>} : memref<4x384xf32, #tpu.memory_space<vmem>>, vector<2x128xf32>,
    %c5_154 = arith.constant 5 : index
    %c0_155 = arith.constant 0 : index
    %120 = tpu.strided_load %arg17[%c5_154, %c0_155] {strides = array<i32: 2, 1>} : memref<8x128xf32, #tpu.memory_space<vmem>>, vector<2x128xf32>
    %c2_156 = arith.constant 2 : index
    %c256_157 = arith.constant 256 : index
    %121 = vector.load %arg18[%c2_156, %c256_157] : memref<4x384xf32, #tpu.memory_space<vmem>>, vector<2x128xf32>
    tpu.vector_store %arg18[%c2_156, %c256_157], %120 {strides = array<i32>} : memref<4x384xf32, #tpu.memory_space<vmem>>, vector<2x128xf32>,
    %c0_158 = arith.constant 0 : index
    %c0_159 = arith.constant 0 : index
    %122 = vector.load %arg18[%c0_158, %c0_159] : memref<4x384xf32, #tpu.memory_space<vmem>>, vector<4x384xf32>
    %123 = arith.truncf %122 : vector<4x384xf32> to vector<4x384xbf16>
    %c0_160 = arith.constant 0 : index
    %c0_161 = arith.constant 0 : index
    %124 = vector.load %arg7[%c0_160, %c0_161] : memref<384x128xbf16, #tpu.memory_space<vmem>>, vector<384x128xbf16>
    %cst_162 = arith.constant dense<0.000000e+00> : vector<4x128xf32>
    %125 = tpu.matmul %123, %124, %cst_162 {dimension_numbers = #tpu.dot_dimension_numbers<[1], [0], [0], [1], [0, 0, 1, 1], [], []>} : vector<4x384xbf16>, vector<384x128xbf16>, vector<4x128xf32> -> vector<4x128xf32>
    %c0_163 = arith.constant 0 : index
    %c0_164 = arith.constant 0 : index
    %126 = vector.load %arg8[%c0_163, %c0_164] : memref<2x128xf32, #tpu.memory_space<vmem>>, vector<2x128xf32>
    %127 = vector.extract_strided_slice %126 {offsets = [0, 0], sizes = [1, 128], strides = [1, 1]} : vector<2x128xf32> to vector<1x128xf32>
    %128 = vector.broadcast %127 : vector<1x128xf32> to vector<4x128xf32>
    %129 = arith.addf %125, %128 : vector<4x128xf32>
    %cst_165 = arith.constant 0.000000e+00 : f32
    %130 = vector.broadcast %cst_165 : f32 to vector<4x128xf32>
    %131 = arith.maximumf %129, %130 : vector<4x128xf32>
    %132 = vector.extract_strided_slice %126 {offsets = [1, 0], sizes = [1, 128], strides = [1, 1]} : vector<2x128xf32> to vector<1x128xf32>
    %133 = vector.broadcast %132 : vector<1x128xf32> to vector<4x128xf32>
    %134 = arith.addf %131, %133 : vector<4x128xf32>
    %135 = vector.extract_strided_slice %134 {offsets = [0, 0], sizes = [2, 128], strides = [1, 1]} : vector<4x128xf32> to vector<2x128xf32>
    %cst_166 = arith.constant dense<0.000000e+00> : vector<128xf32>
    %136 = vector.multi_reduction <add>, %135, %cst_166 [0] : vector<2x128xf32> to vector<128xf32>
    %137 = vector.shape_cast %136 : vector<128xf32> to vector<1x128xf32>
    %138 = vector.extract_strided_slice %134 {offsets = [2, 0], sizes = [2, 128], strides = [1, 1]} : vector<4x128xf32> to vector<2x128xf32>
    %cst_167 = arith.constant dense<0.000000e+00> : vector<128xf32>
    %139 = vector.multi_reduction <add>, %138, %cst_167 [0] : vector<2x128xf32> to vector<128xf32>
    %140 = vector.shape_cast %139 : vector<128xf32> to vector<1x128xf32>
    %141 = tpu.concatenate %137, %140 in 0 : vector<1x128xf32>, vector<1x128xf32> -> vector<2x128xf32>
    %142 = arith.truncf %141 : vector<2x128xf32> to vector<2x128xbf16>
    %c0_168 = arith.constant 0 : index
    %c0_169 = arith.constant 0 : index
    %143 = vector.load %arg9[%c0_168, %c0_169] : memref<128x2xbf16, #tpu.memory_space<vmem>>, vector<128x2xbf16>
    %cst_170 = arith.constant dense<0.000000e+00> : vector<2x2xf32>
    %144 = tpu.matmul %142, %143, %cst_170 {dimension_numbers = #tpu.dot_dimension_numbers<[1], [0], [0], [1], [0, 0, 1, 1], [], []>} : vector<2x128xbf16>, vector<128x2xbf16>, vector<2x2xf32> -> vector<2x2xf32>
    %c0_171 = arith.constant 0 : index
    %c0_172 = arith.constant 0 : index
    %145 = vector.load %arg10[%c0_171, %c0_172] : memref<1x2xf32, #tpu.memory_space<vmem>>, vector<1x2xf32>
    %146 = vector.broadcast %145 : vector<1x2xf32> to vector<2x2xf32>
    %147 = arith.addf %144, %146 : vector<2x2xf32>
    %c0_173 = arith.constant 0 : index
    %c0_174 = arith.constant 0 : index
    %148 = vector.load %arg11[%c0_173, %c0_174] : memref<2x2xf32, #tpu.memory_space<vmem>>, vector<2x2xf32>
    tpu.vector_store %arg11[%c0_173, %c0_174], %147 {strides = array<i32>} : memref<2x2xf32, #tpu.memory_space<vmem>>, vector<2x2xf32>,
    return
  }
}

</mosaic_0001>

<bundles_post_ra>
// kernel: drone_classifier_forward.1
= control target key start
LH: loop header
LB: loop body
LE: loop exit
PB: predicated region body
PF: predicated region fallthrough
CT: control target
= control target key end

     0   :  { %16 = vsyncpa [#allocation10], 0  ;;  %s2584_s0 = inlined_call_operand.vmem [shape: f32[64,64], index: 0, kind: input, shape index: {}]   ;;  %s2585_s1 = inlined_call_operand.hbm [shape: bf16[320,128], index: 1, kind: input, shape index: {}]   ;;  %s2586_s2 = inlined_call_operand.vmem [shape: f32[2,128], index: 2, kind: input, shape index: {}]   ;;  %s2587_s3 = inlined_call_operand.vmem [shape: bf16[384,128], index: 3, kind: input, shape index: {}]   ;;  %s2588_s4 = inlined_call_operand.vmem [shape: f32[2,128], index: 4, kind: input, shape index: {}]   ;;  %s2589_s5 = inlined_call_operand.vmem [shape: bf16[384,128], index: 5, kind: input, shape index: {}]   ;;  %s2590_s6 = inlined_call_operand.vmem [shape: f32[2,128], index: 6, kind: input, shape index: {}]   ;;  %s2591_s7 = inlined_call_operand.vmem [shape: bf16[384,128], index: 7, kind: input, shape index: {}]   ;;  %s2592_s8 = inlined_call_operand.vmem [shape: f32[2,128], index: 8, kind: input, shape index: {}]   ;;  %s2593_s9 = inlined_call_operand.vmem [shape: bf16[128,2], index: 9, kind: input, shape index: {}]   ;;  %s2594_s10 = inlined_call_operand.vmem [shape: f32[1,2], index: 10, kind: input, shape index: {}]   ;;  %s2595_s11 = inlined_call_operand.hbm [shape: f32[2,2], index: 11, kind: output, shape index: {}]  }
   0x1   :  { %17 = vsyncpa [#allocation11], 0  ;;  %s2080_s17 = smov [#allocation9]   ;;  %s2032_s21 = scalar_lea.hbm %s2585_s1, 2560 }
   0x2   :  { %s25_s18 = sshll.u32 %s2080_s17, 4  ;;  %p2033_p0 = scmp.ne.s32.totalorder %s2585_s1, %s2032_s21  ;;  %s26_s18 = int_to_ptr.vmem [resolvable:$true] %s25_s18 }
   0x3   :  { %p2036_p1 = scmp.lt.u32.totalorder %s2032_s21, %s2585_s1 }
   0x5   :  { %p2038_p2 = pnand %p2036_p1, %p2033_p0 }
   0x7   :  { %2041 = shalt.err (!%p2038_p2)
}
   0x8   :  { %s2042_s26 = scalar_lea.vmem %s26_s18, 2560  ;;  %p2047_p4 = scmp.lt.s32.totalorder %s26_s18, %s26_s18 }
   0x9   :  { %p2043_p3 = scmp.ne.s32.totalorder %s26_s18, %s2042_s26  ;;  %p2048_p5 = scmp.lt.s32.totalorder %s2042_s26, %s2042_s26 }
   0xb   :  { %p2049_p6 = por %p2048_p5, %p2047_p4 }
   0xd   :  { %p2050_p7 = pnand %p2049_p6, %p2043_p3 }
   0xf   :  { %2053 = shalt.err (!%p2050_p7)
}
  0x10   :  { %s2081_s27 = smov 64   ;;  %s2082_s28 = smov 4  }
  0x11   :  { %31 = dma.hbm_to_vmem [thread:$0]  %s2585_s1, 2560, %s26_s18, [#allocation10], %s2081_s27, %s2081_s27, %s2082_s28  }
  0x12   :  { %2076 = dma.done.wait [#allocation10], 2560  }
  0x13   :  { %2077 = vsyncadd [#allocation10], 4294964736  ;;  %vm54_vm0 = vcmask 516096   ;;  %vm85_vm1 = vcmask 1040896   ;;  %v2083_v0 = vmov 0.0   ;;  %vm61_vm2 = vcmask 1040384  }
  0x14   :  { %55 = vst.msk [vmem:[#allocation2] sm:$0x1] %vm54_vm0, %v2083_v0  ;;  %71 = vst.msk [vmem:[#allocation2 + $0x30] sm:$0x1] %vm54_vm0, %v2083_v0  ;;  %v1586_v1 = vld [vmem:[%s2584_s0 + $0x1] ss:$2 sm:$0xff] }
  0x15   :  { %156 = vst.msk [vmem:[#allocation2 + $0x2f] sm:$0x1] %vm54_vm0, %v2083_v0  ;;  %164 = vst.msk [vmem:[#allocation2 + $0x5f] sm:$0x1] %vm54_vm0, %v2083_v0  ;;  %v1579_v2 = vld [vmem:[%s2584_s0 + $0x1] ss:$2 sm:$0xff]  ;;  %136 = vrot.lane.b32.xlu0 %v1586_v1, %s2081_s27 }
  0x16   :  { %474 = vst [vmem:[#allocation4] sm:$0x1] %v2083_v0  ;;  %481 = vst [vmem:[#allocation4 + $0x18] sm:$0x1] %v2083_v0  ;;  %v93_v3 = vrot.slane %v1579_v2, 7  ;;  %v1931_v8 = vld [vmem:[#allocation9 + $0x40] sm:$0xff]  }
  0x17   :  { %795 = vst [vmem:[#allocation6] sm:$0x1] %v2083_v0  ;;  %802 = vst [vmem:[#allocation6 + $0x4] sm:$0x1] %v2083_v0  ;;  %v1587_v5 = vld [vmem:[%s2584_s0 + $0x11] ss:$2 sm:$0xff]  ;;  %1697 = vmatprep.subr.bf16.mxu0 %v1931_v8 }
  0x18   :  { %1114 = vst [vmem:[#allocation8] sm:$0x1] %v2083_v0  ;;  %1117 = vst [vmem:[#allocation8 + $0x2] sm:$0x1] %v2083_v0  ;;  %v1581_v7 = vld [vmem:[%s2584_s0 + $0x21] ss:$2 sm:$0xff]  ;;  %96 = vrot.lane.b32.xlu1 %v93_v3, %s2081_s27 }
  0x19   :  { %86 = vst.msk [vmem:[#allocation2] sm:$0x1] %vm85_vm1, %v2083_v0  ;;  %106 = vst.msk [vmem:[#allocation2 + $0x30] sm:$0x1] %vm85_vm1, %v2083_v0  ;;  %v1588_v11 = vld [vmem:[%s2584_s0 + $0x21] ss:$2 sm:$0xff]  ;;  %138 = vrot.lane.b32.xlu0 %v1587_v5, %s2081_s27 }
  0x1a   :  { %v1580_v4 = vld [vmem:[%s2584_s0 + $0x11] ss:$2 sm:$0x7f]  ;;  %v113_v15 = vrot.slane %v1581_v7, 7  ;;  %vm69_vm3 = vcmask 523264   ;;  %v1937_v20 = vld [vmem:[#allocation9 + $0x58] sm:$0xff]  }
  0x1b   :  { %v94_v6 = vrot.slane %v1580_v4, 7  ;;  %v1582_v9 = vld [vmem:[%s2584_s0 + $0x31] ss:$2 sm:$0x7f]  ;;  %v124_v21 = vld [vmem:[%s2584_s0] ss:$2 sm:$0xff] }
  0x1c   :  { %v1932_v12 = vld [vmem:[#allocation9] sm:$0xff]   ;;  %v1933_v14 = vld [vmem:[#allocation9 + $0x48] sm:$0xff]   ;;  %v114_v17 = vrot.slane %v1582_v9, 7  ;;  %v1935_v18 = vld [vmem:[#allocation9 + $0x50] sm:$0xff]   ;;  %126 = vst.msk [vmem:[#allocation2 + $0x8] sm:$0xff] %vm69_vm3, %v124_v21  ;;  %vm67_vm4 = vcmask 523265  }
  0x1d   :  { %v95_v10 = vsel %vm61_vm2, %v93_v3, %v94_v6  ;;  %v1589_v13 = vld [vmem:[%s2584_s0 + $0x31] ss:$2 sm:$0xff]  ;;  %1698 = vmatpush3.bf16.msra.mxu0 %v1932_v12  ;;  %148 = vrot.lane.b32.xlu0 %v1588_v11, %s2081_s27  ;;  %v1938_v23 = vld [vmem:[#allocation9 + $0x18] sm:$0xff]   ;;  %v1583_v27 = vld [vmem:[%s2584_s0 + $0x10] ss:$2 sm:$0xff]  ;;  %vm162_vm5 = vcmask 522240  }
  0x1e   :  { %98 = vrot.lane.b32.xlu1 %v95_v10, %s2081_s27  ;;  %v1934_v16 = vld [vmem:[#allocation9 + $0x8] sm:$0xff]   ;;  %1699 = vmatprep.subr.bf16.mxu0 %v1933_v14  ;;  %v1936_v19 = vld [vmem:[#allocation9 + $0x10] sm:$0xff]   ;;  %v115_v22 = vsel %vm61_vm2, %v113_v15, %v114_v17  ;;  %v1939_v25 = vld [vmem:[#allocation9 + $0x60] sm:$0xff]   ;;  %127 = vst.msk [vmem:[#allocation2 + $0x20] sm:$0xff] %vm69_vm3, %v1583_v27  ;;  %vm104_vm6 = vcmask 1048064   ;;  %vm102_vm7 = vcmask 1048065  }
  0x1f   :  { %v56_v24 = vld [vmem:[%s2584_s0] ss:$2 sm:$0xff]  ;;  %v1576_v30 = vld [vmem:[%s2584_s0 + $0x10] ss:$2 sm:$0x7f]  ;;  %vm2084_vm8 = vmmov 0  }
  0x20   :  { %v62_v26 = vrot.slane %v56_v24, 7  ;;  %v1942_v28 = vld [vmem:[#allocation9 + $0x80] sm:$0xff]   ;;  %v1941_v31 = vld [vmem:[#allocation9 + $0x68] sm:$0xff]   ;;  %v63_v32 = vrot.slane %v1576_v30, 7  ;;  %v1944_v38 = vld [vmem:[#allocation9 + $0x70] sm:$0xff]   ;;  %vm1428_vm9 = vcmask 1041408  }
  0x21   :  { %1700 = vmatpush3.bf16.msra.mxu0 %v1934_v16  ;;  %116 = vrot.lane.b32.xlu0 %v113_v15, %s2081_s27  ;;  %v1940_v29 = vld [vmem:[#allocation9 + $0x20] sm:$0xff]   ;;  %v1945_v33 = vld [vmem:[#allocation9 + $0x88] sm:$0xff]   ;;  %v1948_v39 = vld [vmem:[#allocation9 + $0x90] sm:$0xff]   ;;  %s2085_s14 = smov [#allocation12]   ;;  %vm1559_vm10 = vcmask 9216  }
  0x22   :  { %150 = vrot.lane.b32.xlu1 %v1589_v13, %s2081_s27  ;;  %1701 = vmatprep.subr.bf16.mxu0 %v1935_v18  ;;  %68 = vst.msk [vmem:[#allocation2] sm:$0xfe] %vm67_vm4, %v62_v26  ;;  %v1943_v34 = vld [vmem:[#allocation9 + $0x28] sm:$0xff]   ;;  %v64_v35 = vsel %vm61_vm2, %v62_v26, %v63_v32  ;;  %v1584_v36 = vld [vmem:[%s2584_s0 + $0x20] ss:$2 sm:$0xff]  ;;  %s1567_s15 = sshll.u32 %s2085_s14, 4  ;;  %s1568_s15 = int_to_ptr.vmem [resolvable:$true] %s1567_s15 }
  0x23   :  { %1833 = vmatprep.subr.bf16.mxu1 %v1942_v28  ;;  %70 = vst.msk [vmem:[#allocation2 + $0x18] sm:$0xff] %vm69_vm3, %v64_v35  ;;  %130 = vst.msk [vmem:[#allocation2 + $0x38] sm:$0xff] %vm69_vm3, %v1584_v36  ;;  %v1585_v37 = vld [vmem:[%s2584_s0 + $0x30] ss:$2 sm:$0xff]  ;;  %v1577_v41 = vld [vmem:[%s2584_s0 + $0x20] ss:$2 sm:$0xff]  ;;  %p2059_p9 = scmp.lt.s32.totalorder %s1568_s15, %s1568_s15 }
  0x24   :  { %1834 = vmatpush3.bf16.msra.mxu1 %v1942_v28  ;;  %131 = vst.msk [vmem:[#allocation2 + $0x50] sm:$0xff] %vm69_vm3, %v1585_v37  ;;  %v1946_v40 = vld [vmem:[#allocation9 + $0x30] sm:$0xff]   ;;  %v78_v43 = vrot.slane %v1577_v41, 7  ;;  %v1950_v45 = vld [vmem:[#allocation9 + $0x98] sm:$0xff]   ;;  %v1957_v18 = vld [vmem:[%s2587_s3 + $0x90] sm:$0xff]  }
  0x25   :  { %1702 = vmatpush3.bf16.msra.mxu0 %v1936_v19  ;;  %1835 = vmatprep.subr.bf16.mxu1 %v1945_v33  ;;  %v1578_v42 = vld [vmem:[%s2584_s0 + $0x30] ss:$2 sm:$0x7f]  ;;  %v1947_v48 = vld [vmem:[#allocation9 + $0x78] sm:$0xff]  }
  0x26   :  { %118 = vrot.lane.b32.xlu1 %v115_v22, %s2081_s27  ;;  %1703 = vmatprep.subr.bf16.mxu0 %v1937_v20  ;;  %v79_v44 = vrot.slane %v1578_v42, 7  ;;  %v1590_v46 = vld [vmem:[%s2584_s0 + $0x2] ss:$2 sm:$0xff]  ;;  %v1591_v47 = vld [vmem:[%s2584_s0 + $0x12] ss:$2 sm:$0x7f] }
  0x27   :  { %83 = vst.msk [vmem:[#allocation2 + $0x30] sm:$0xfe] %vm67_vm4, %v78_v43  ;;  %v1593_v50 = vld [vmem:[%s2584_s0 + $0x32] ss:$2 sm:$0x7f]  ;;  %v1949_v52 = vld [vmem:[#allocation9 + $0x38] sm:$0xff]  }
  0x28   :  { %1836 = vmatpush3.bf16.msra.mxu1 %v1945_v33  ;;  %v80_v49 = vsel %vm61_vm2, %v78_v43, %v79_v44  ;;  %161 = vst.msk [vmem:[#allocation2 + $0x10] sm:$0xff] %vm69_vm3, %v1590_v46  ;;  %v1592_v51 = vld [vmem:[%s2584_s0 + $0x22] ss:$2 sm:$0xff]  ;;  %v1960_v21 = vld [vmem:[%s2587_s3 + $0x98] sm:$0xff]   ;;  %v230_v44 = vlaneseq  ;;  %s2054_s27 = scalar_lea.vmem %s1568_s15, 32 }
  0x29   :  { %1704 = vmatpush3.bf16.msra.mxu0 %v1938_v23  ;;  %1837 = vmatprep.subr.bf16.mxu1 %v1948_v39  ;;  %163 = vst.msk [vmem:[#allocation2 + $0x28] sm:$0x7f] %vm162_vm5, %v1591_v47  ;;  %170 = vst.msk [vmem:[#allocation2 + $0x58] sm:$0x7f] %vm162_vm5, %v1593_v50  ;;  %v1951_v16 = vld [vmem:[%s2587_s3 + $0x80] sm:$0xff]   ;;  %v1954_v17 = vld [vmem:[%s2587_s3 + $0x88] sm:$0xff]   ;;  %p2055_p8 = scmp.ne.s32.totalorder %s1568_s15, %s2054_s27  ;;  %p2060_p10 = scmp.lt.s32.totalorder %s2054_s27, %s2054_s27 }
  0x2a   :  { %1705 = vmatprep.subr.bf16.mxu0 %v1939_v25  ;;  %84 = vst.msk [vmem:[#allocation2 + $0x48] sm:$0xff] %vm69_vm3, %v80_v49  ;;  %169 = vst.msk [vmem:[#allocation2 + $0x40] sm:$0xff] %vm69_vm3, %v1592_v51  ;;  %v1952_v19 = vld [vmem:[%s2587_s3 + $0x40] sm:$0xff]   ;;  %v1955_v22 = vld [vmem:[%s2587_s3 + $0x48] sm:$0xff]  }
  0x2b   :  { %v1953_v20 = vld [vmem:[%s2587_s3] sm:$0xff]   ;;  %v1956_v23 = vld [vmem:[%s2587_s3 + $0x8] sm:$0xff]   ;;  %v1958_v25 = vld [vmem:[%s2587_s3 + $0x50] sm:$0xff]   ;;  %p2061_p11 = por %p2060_p10, %p2059_p9 }
  0x2c   :  { %1838 = vmatpush3.bf16.msra.mxu1 %v1948_v39  ;;  %v1963_v24 = vld [vmem:[%s2587_s3 + $0xa0] sm:$0xff]   ;;  %v1959_v26 = vld [vmem:[%s2587_s3 + $0x10] sm:$0xff]   ;;  %v1966_v27 = vld [vmem:[%s2587_s3 + $0xa8] sm:$0xff]  }
  0x2d   :  { %1706 = vmatpush3.bf16.msra.mxu0 %v1940_v29  ;;  %1839 = vmatprep.subr.bf16.mxu1 %v1950_v45  ;;  %v1961_v28 = vld [vmem:[%s2587_s3 + $0x58] sm:$0xff]   ;;  %v1969_v30 = vld [vmem:[%s2587_s3 + $0xb0] sm:$0xff]   ;;  %v1965_v32 = vld [vmem:[%s2587_s3 + $0x20] sm:$0xff]   ;;  %p2062_p12 = pnand %p2061_p11, %p2055_p8 }
  0x2e   :  { %1707 = vmatprep.subr.bf16.mxu0 %v1941_v31  ;;  %v1962_v29 = vld [vmem:[%s2587_s3 + $0x18] sm:$0xff]   ;;  %v1964_v31 = vld [vmem:[%s2587_s3 + $0x60] sm:$0xff]   ;;  %v1968_v35 = vld [vmem:[%s2587_s3 + $0x28] sm:$0xff]  }
  0x2f   :  { %v173_v53 = vld [vmem:[#allocation2 + $0x10] sm:$0xff]  ;;  %v1972_v33 = vld [vmem:[%s2587_s3 + $0xb8] sm:$0xff]   ;;  %v229_v47 = vld [vmem:[%s2586_s2] sm:$0x3] }
  0x30   :  { %1840 = vmatpush3.bf16.msra.mxu1 %v1950_v45  ;;  %v176_v54 = vld [vmem:[#allocation2 + $0x28] sm:$0xff]  ;;  %v182_v57 = vld [vmem:[#allocation2 + $0x58] sm:$0xff]  ;;  %v1970_v36 = vld [vmem:[%s2587_s3 + $0x70] sm:$0xff]   ;;  %v231_v45 = vshrl.u32 %v230_v44, 7 }
  0x31   :  { %1708 = vmatpush3.bf16.msra.mxu0 %v1943_v34  ;;  %v185_v55 = vpack.c.bf16 %v176_v54, %v173_v53  ;;  %v179_v56 = vld [vmem:[#allocation2 + $0x40] sm:$0xff]  ;;  %1731 = vmatprep.subr.bf16.mxu1 %v1952_v19  ;;  %v1967_v34 = vld [vmem:[%s2587_s3 + $0x68] sm:$0xff]   ;;  %v1971_v37 = vld [vmem:[%s2587_s3 + $0x30] sm:$0xff]  }
  0x32   :  { %1709 = vmatprep.subr.bf16.mxu0 %v1944_v38  ;;  %v188_v58 = vpack.c.bf16 %v182_v57, %v179_v56  ;;  %v1973_v38 = vld [vmem:[%s2587_s3 + $0x78] sm:$0xff]   ;;  %v2347_v46 = vsub.s32 0, %v231_v45  ;;  %v2353_v53 = vsub.s32 1, %v231_v45  ;;  %v1990_v44 = vld [vmem:[%s2589_s5 + $0x68] sm:$0xff]  }
  0x33   :  { %1841 = vmatprep.mubr.msk.bf16.mxu1 %vm69_vm3, %v185_v55  ;;  %v1974_v42 = vld [vmem:[%s2587_s3 + $0x38] sm:$0xff]   ;;  %v1991_v45 = vld [vmem:[%s2589_s5 + $0xa8] sm:$0xff]  }
  0x34   :  { %1842 = vmatmul.mubr.msk.bf16.vlgmr.msra.gmra.mrb[0].mxu1 %vm69_vm3, %v188_v58  ;;  %v233_v49 = vrot.slane %v229_v47, %v2347_v46  ;;  %v465_v58 = vrot.slane %v229_v47, %v2353_v53  ;;  %v1992_v47 = vld [vmem:[%s2589_s5 + $0x28] sm:$0xff]  }
  0x35   :  { %1710 = vmatpush3.bf16.msra.mxu0 %v1946_v40  ;;  %1732 = vmatpush3.bf16.msra.mxu1 %v1953_v20 }
  0x36   :  { %1711 = vmatprep.subr.bf16.mxu0 %v1947_v48  ;;  %1733 = vmatprep.subr.bf16.mxu1 %v1955_v22 }
  0x39   :  { %1712 = vmatpush3.bf16.msra.mxu0 %v1949_v52  ;;  %1734 = vmatpush3.bf16.msra.mxu1 %v1956_v23 }
  0x3a   :  { %1845 = vmatprep.subr.bf16.mxu0 %v2083_v0  ;;  %1735 = vmatprep.subr.bf16.mxu1 %v1958_v25 }
  0x3d   :  { %1736 = vmatpush3.bf16.msra.mxu1 %v1959_v26 }
  0x3e   :  { %1737 = vmatprep.subr.bf16.mxu1 %v1961_v28 }
  0x41   :  { %1738 = vmatpush3.bf16.msra.mxu1 %v1962_v29  ;;  %v1975_v29 = vld [vmem:[%s2589_s5 + $0x40] sm:$0xff]  }
  0x42   :  { %1739 = vmatprep.subr.bf16.mxu1 %v1964_v31  ;;  %v1977_v31 = vld [vmem:[%s2589_s5] sm:$0xff]  }
  0x45   :  { %1740 = vmatpush3.bf16.msra.mxu1 %v1965_v32  ;;  %v1978_v32 = vld [vmem:[%s2589_s5 + $0x48] sm:$0xff]  }
  0x46   :  { %1741 = vmatprep.subr.bf16.mxu1 %v1967_v34  ;;  %v1980_v34 = vld [vmem:[%s2589_s5 + $0x8] sm:$0xff]  }
  0x49   :  { %1742 = vmatpush3.bf16.msra.mxu1 %v1968_v35  ;;  %v1981_v35 = vld [vmem:[%s2589_s5 + $0x50] sm:$0xff]  }
  0x4a   :  { %1743 = vmatprep.subr.bf16.mxu1 %v1970_v36  ;;  %v1982_v36 = vld [vmem:[%s2589_s5 + $0x90] sm:$0xff]  }
  0x4d   :  { %1744 = vmatpush3.bf16.msra.mxu1 %v1971_v37  ;;  %v1983_v37 = vld [vmem:[%s2589_s5 + $0x10] sm:$0xff]  }
  0x4e   :  { %1745 = vmatprep.subr.bf16.mxu1 %v1973_v38  ;;  %v1984_v38 = vld [vmem:[%s2589_s5 + $0x58] sm:$0xff]  }
  0x51   :  { %1746 = vmatpush3.bf16.msra.mxu1 %v1974_v42  ;;  %v1988_v42 = vld [vmem:[%s2589_s5 + $0xa0] sm:$0xff]  }
  0x52   :  { %1762 = vmatprep.subr.bf16.mxu1 %v1975_v29  ;;  %v1999_v29 = vld [vmem:[%s2591_s7 + $0x80] sm:$0xff]  }
  0x87   :  { %v137_v59 = vpop.permute.xlu0 %136 }
  0x88   :  { %142 = vst.msk [vmem:[#allocation2 + $0x8] sm:$0xff] %vm104_vm6, %v137_v59 }
  0x8a   :  { %v97_v60 = vpop.permute.xlu1 %96 }
  0x8b   :  { %103 = vst.msk [vmem:[#allocation2] sm:$0xfe] %vm102_vm7, %v97_v60  ;;  %v139_v61 = vpop.permute.xlu0 %138 }
  0x8c   :  { %143 = vst.msk [vmem:[#allocation2 + $0x20] sm:$0xff] %vm104_vm6, %v139_v61 }
  0x8f   :  { %v149_v63 = vpop.permute.xlu0 %148  ;;  %v172_v3 = vld [vmem:[#allocation2 + $0x8] sm:$0xff] }
  0x90   :  { %v99_v62 = vpop.permute.xlu1 %98  ;;  %154 = vst.msk [vmem:[#allocation2 + $0x38] sm:$0xff] %vm104_vm6, %v149_v63 }
  0x91   :  { %105 = vst.msk [vmem:[#allocation2 + $0x18] sm:$0xff] %vm104_vm6, %v99_v62 }
  0x92   :  { %v171_v7 = vld [vmem:[#allocation2] sm:$0xff] }
  0x93   :  { %v117_v2 = vpop.permute.xlu0 %116  ;;  %v175_v4 = vld [vmem:[#allocation2 + $0x20] sm:$0xff] }
  0x94   :  { %v151_v1 = vpop.permute.xlu1 %150  ;;  %122 = vst.msk [vmem:[#allocation2 + $0x30] sm:$0xfe] %vm102_vm7, %v117_v2  ;;  %v184_v5 = vpack.c.bf16 %v175_v4, %v172_v3 }
  0x95   :  { %155 = vst.msk [vmem:[#allocation2 + $0x50] sm:$0xff] %vm104_vm6, %v151_v1 }
  0x96   :  { %392 = vmatprep.mubr.bf16.mxu0 %v184_v5 }
  0x97   :  { %v178_v10 = vld [vmem:[#allocation2 + $0x38] sm:$0xff] }
  0x98   :  { %v119_v6 = vpop.permute.xlu1 %118  ;;  %v174_v8 = vld [vmem:[#allocation2 + $0x18] sm:$0xff] }
  0x99   :  { %123 = vst.msk [vmem:[#allocation2 + $0x48] sm:$0xff] %vm104_vm6, %v119_v6  ;;  %v183_v9 = vpack.c.bf16 %v174_v8, %v171_v7 }
  0x9b   :  { %393 = vmatmul.mubr.bf16.vlgmr.msra.gmra.mrb[0].mxu0 %v183_v9  ;;  %v177_v13 = vld [vmem:[#allocation2 + $0x30] sm:$0xff] }
  0x9c   :  { %v181_v11 = vld [vmem:[#allocation2 + $0x50] sm:$0xff]  ;;  %1846 = vmatpush3.bf16.msra.mxu0 %v1951_v16 }
  0x9d   :  { %v187_v12 = vpack.c.bf16 %v181_v11, %v178_v10  ;;  %1847 = vmatprep.subr.bf16.mxu0 %v2083_v0 }
  0x9f   :  { %400 = vmatprep.mubr.bf16.mxu0 %v187_v12 }
  0xa0   :  { %v180_v14 = vld [vmem:[#allocation2 + $0x48] sm:$0xff]  ;;  %1848 = vmatpush3.bf16.msra.mxu0 %v1954_v17 }
  0xa1   :  { %v186_v15 = vpack.c.bf16 %v180_v14, %v177_v13  ;;  %1849 = vmatprep.subr.bf16.mxu0 %v2083_v0 }
  0xa3   :  { %401 = vmatmul.mubr.bf16.gmra.mrb[4].mxu0 %v186_v15 }
  0xa4   :  { %1850 = vmatpush3.bf16.msra.mxu0 %v1957_v18  ;;  %1861 = vmatprep.mubr.msk.bf16.mxu0 %vm2084_vm8, %v2083_v0 }
  0xa5   :  { %1851 = vmatprep.subr.bf16.mxu0 %v2083_v0 }
  0xa8   :  { %1852 = vmatpush3.bf16.msra.mxu0 %v1960_v21 }
  0xa9   :  { %1853 = vmatprep.subr.bf16.mxu0 %v2083_v0 }
  0xac   :  { %1854 = vmatpush3.bf16.msra.mxu0 %v1963_v24 }
  0xad   :  { %1855 = vmatprep.subr.bf16.mxu0 %v2083_v0 }
  0xb0   :  { %1856 = vmatpush3.bf16.msra.mxu0 %v1966_v27 }
  0xb1   :  { %1857 = vmatprep.subr.bf16.mxu0 %v2083_v0 }
  0xb4   :  { %1858 = vmatpush3.bf16.msra.mxu0 %v1969_v30  ;;  %v1976_v30 = vld [vmem:[%s2589_s5 + $0x80] sm:$0xff]  }
  0xb5   :  { %1859 = vmatprep.subr.bf16.mxu0 %v2083_v0 }
  0xb8   :  { %1860 = vmatpush3.bf16.msra.mxu0 %v1972_v33  ;;  %v1979_v33 = vld [vmem:[%s2589_s5 + $0x88] sm:$0xff]  }
  0xb9   :  { %1865 = vmatprep.subr.bf16.mxu0 %v2083_v0 }
 0x107   :  { %v1843_v39 = vpop.f32.mrb[0].mxu1 }
 0x108   :  { %v443_v40 = vpop.f32.mrb[1].mxu1 }
 0x109   :  { %v1844_v41 = vpop.f32.mrb[2].mxu1 }
 0x10a   :  { %v446_v43 = vpop.f32.mrb[3].mxu1 }
 0x16e   :  { %v1713_v48 = vpop.f32.mrb[0].mxu0 }
 0x16f   :  { %v1714_v50 = vpop.f32.mrb[1].mxu0 }
 0x170   :  { %v1715_v51 = vadd.f32 %v1714_v50, %v1713_v48  ;;  %v1716_v52 = vpop.f32.mrb[2].mxu0  ;;  %v1993_v48 = vld [vmem:[%s2589_s5 + $0x70] sm:$0xff]  }
 0x171   :  { %v1717_v54 = vpop.f32.mrb[3].mxu0  ;;  %v1995_v50 = vld [vmem:[%s2589_s5 + $0x30] sm:$0xff]  }
 0x172   :  { %v1718_v55 = vadd.f32 %v1717_v54, %v1716_v52  ;;  %v395_v56 = vadd.f32 %v1715_v51, %v233_v49  ;;  %v1996_v51 = vld [vmem:[%s2589_s5 + $0x78] sm:$0xff]  }
 0x173   :  { %v1997_v52 = vld [vmem:[%s2589_s5 + $0xb8] sm:$0xff]  }
 0x174   :  { %v444_v57 = vadd.f32 %v443_v40, %v395_v56  ;;  %v398_v59 = vadd.f32 %v1718_v55, %v233_v49  ;;  %v1986_v40 = vld [vmem:[%s2589_s5 + $0x18] sm:$0xff]  }
 0x175   :  { %v1998_v54 = vld [vmem:[%s2589_s5 + $0x38] sm:$0xff]  }
 0x176   :  { %v458_v60 = vmax.f32 %v444_v57, 0.0  ;;  %v447_v61 = vadd.f32 %v446_v43, %v398_v59  ;;  %v1719_v62 = vpop.f32.mrb[4].mxu0  ;;  %v1989_v43 = vld [vmem:[%s2589_s5 + $0x20] sm:$0xff]  }
 0x177   :  { %v1720_v63 = vpop.f32.mrb[5].mxu0  ;;  %v554_v59 = vld [vmem:[%s2588_s4] sm:$0x3] }
 0x178   :  { %v466_v1 = vadd.f32 %v465_v58, %v458_v60  ;;  %v459_v2 = vmax.f32 %v447_v61, 0.0  ;;  %v1721_v3 = vadd.f32 %v1720_v63, %v1719_v62  ;;  %v1722_v4 = vpop.f32.mrb[6].mxu0  ;;  %v558_v61 = vrot.slane %v554_v59, %v2347_v46 }
 0x179   :  { %v1723_v5 = vpop.f32.mrb[7].mxu0 }
 0x17a   :  { %470 = vst [vmem:[#allocation3] sm:$0xff] %v466_v1  ;;  %v467_v6 = vadd.f32 %v465_v58, %v459_v2  ;;  %v403_v7 = vadd.f32 %v1721_v3, %v233_v49  ;;  %v1724_v8 = vadd.f32 %v1723_v5, %v1722_v4 }
 0x17c   :  { %471 = vst [vmem:[#allocation3 + $0x8] sm:$0xff] %v467_v6  ;;  %v452_v9 = vadd.f32 %v1843_v39, %v403_v7  ;;  %v406_v10 = vadd.f32 %v1724_v8, %v233_v49  ;;  %v1985_v39 = vld [vmem:[%s2589_s5 + $0x98] sm:$0xff]   ;;  %v1994_v49 = vld [vmem:[%s2589_s5 + $0xb0] sm:$0xff]   ;;  %v790_v6 = vrot.slane %v554_v59, %v2353_v53 }
 0x17e   :  { %v460_v11 = vmax.f32 %v452_v9, 0.0  ;;  %v455_v12 = vadd.f32 %v1844_v41, %v406_v10  ;;  %v1987_v41 = vld [vmem:[%s2589_s5 + $0x60] sm:$0xff]  }
 0x180   :  { %v468_v13 = vadd.f32 %v465_v58, %v460_v11  ;;  %v461_v14 = vmax.f32 %v455_v12, 0.0 }
 0x182   :  { %472 = vst [vmem:[#allocation3 + $0x10] sm:$0xff] %v468_v13  ;;  %v469_v15 = vadd.f32 %v465_v58, %v461_v14 }
 0x183   :  { %v476_v16 = vld [vmem:[#allocation3 + $0x1] ss:$2 sm:$0x7f]  ;;  %v488_v17 = vld [vmem:[#allocation3] ss:$2 sm:$0xff] }
 0x184   :  { %v478_v18 = vrot.slane %v476_v16, 7  ;;  %v493_v19 = vld [vmem:[#allocation3 + $0x1] ss:$2 sm:$0xff]  ;;  %473 = vst [vmem:[#allocation3 + $0x18] sm:$0xff] %v469_v15 }
 0x186   :  { %480 = vst [vmem:[#allocation4] sm:$0xfe] %v478_v18 }
 0x18b   :  { %v483_v20 = vld [vmem:[#allocation3 + $0x11] ss:$2 sm:$0x7f]  ;;  %v491_v23 = vld [vmem:[#allocation3 + $0x10] ss:$2 sm:$0xff] }
 0x18c   :  { %v495_v21 = vld [vmem:[#allocation3 + $0x11] ss:$2 sm:$0xff]  ;;  %v485_v22 = vrot.slane %v483_v20, 7  ;;  %v504_v25 = vpack.c.bf16 %v491_v23, %v488_v17 }
 0x18d   :  { %v505_v24 = vpack.c.bf16 %v495_v21, %v493_v19  ;;  %v497_v26 = vld [vmem:[#allocation4] sm:$0xff] }
 0x18e   :  { %487 = vst [vmem:[#allocation4 + $0x18] sm:$0xfe] %v485_v22  ;;  %735 = vmatprep.mubr.bf16.mxu1 %v504_v25 }
 0x18f   :  { %1862 = vmatmul.mubr.bf16.vlgmr.msra.gmra.mrb[8].mxu0 %v505_v24 }
 0x190   :  { %1881 = vmatprep.mubr.msk.bf16.mxu0 %vm2084_vm8, %v2083_v0  ;;  %1866 = vmatpush3.bf16.msra.mxu0 %v1976_v30  ;;  %v2000_v30 = vld [vmem:[%s2591_s7 + $0x40] sm:$0xff]  }
 0x191   :  { %1867 = vmatprep.subr.bf16.mxu0 %v2083_v0 }
 0x194   :  { %1868 = vmatpush3.bf16.msra.mxu0 %v1979_v33  ;;  %v2003_v33 = vld [vmem:[%s2591_s7 + $0x48] sm:$0xff]  }
 0x195   :  { %v500_v27 = vld [vmem:[#allocation4 + $0x18] sm:$0xff]  ;;  %1869 = vmatprep.subr.bf16.mxu0 %v2083_v0 }
 0x196   :  { %v503_v28 = vpack.c.bf16 %v500_v27, %v497_v26 }
 0x198   :  { %736 = vmatmul.mubr.bf16.vlgmr.msra.gmra.mrb[4].mxu1 %v503_v28  ;;  %1870 = vmatpush3.bf16.msra.mxu0 %v1982_v36  ;;  %v2006_v36 = vld [vmem:[%s2591_s7 + $0x50] sm:$0xff]  }
 0x199   :  { %1763 = vmatpush3.bf16.msra.mxu1 %v1977_v31  ;;  %1871 = vmatprep.subr.bf16.mxu0 %v2083_v0  ;;  %v2001_v31 = vld [vmem:[%s2591_s7] sm:$0xff]  }
 0x19a   :  { %1764 = vmatprep.subr.bf16.mxu1 %v1978_v32  ;;  %v2002_v32 = vld [vmem:[%s2591_s7 + $0x88] sm:$0xff]  }
 0x19c   :  { %1872 = vmatpush3.bf16.msra.mxu0 %v1985_v39  ;;  %v2009_v39 = vld [vmem:[%s2591_s7 + $0x58] sm:$0xff]  }
 0x19d   :  { %1765 = vmatpush3.bf16.msra.mxu1 %v1980_v34  ;;  %1873 = vmatprep.subr.bf16.mxu0 %v2083_v0  ;;  %v2004_v34 = vld [vmem:[%s2591_s7 + $0x8] sm:$0xff]  }
 0x19e   :  { %1766 = vmatprep.subr.bf16.mxu1 %v1981_v35  ;;  %v2005_v35 = vld [vmem:[%s2591_s7 + $0x90] sm:$0xff]  }
 0x1a0   :  { %1874 = vmatpush3.bf16.msra.mxu0 %v1988_v42  ;;  %v2012_v42 = vld [vmem:[%s2591_s7 + $0x60] sm:$0xff]  }
 0x1a1   :  { %1767 = vmatpush3.bf16.msra.mxu1 %v1983_v37  ;;  %1875 = vmatprep.subr.bf16.mxu0 %v2083_v0  ;;  %v2007_v37 = vld [vmem:[%s2591_s7 + $0x10] sm:$0xff]  }
 0x1a2   :  { %1768 = vmatprep.subr.bf16.mxu1 %v1984_v38  ;;  %v2008_v38 = vld [vmem:[%s2591_s7 + $0x98] sm:$0xff]  }
 0x1a4   :  { %1876 = vmatpush3.bf16.msra.mxu0 %v1991_v45  ;;  %v2015_v45 = vld [vmem:[%s2591_s7 + $0x68] sm:$0xff]  }
 0x1a5   :  { %1769 = vmatpush3.bf16.msra.mxu1 %v1986_v40  ;;  %1877 = vmatprep.subr.bf16.mxu0 %v2083_v0  ;;  %v2010_v40 = vld [vmem:[%s2591_s7 + $0x18] sm:$0xff]  }
 0x1a6   :  { %1770 = vmatprep.subr.bf16.mxu1 %v1987_v41  ;;  %v2011_v41 = vld [vmem:[%s2591_s7 + $0xa0] sm:$0xff]  }
 0x1a8   :  { %1878 = vmatpush3.bf16.msra.mxu0 %v1994_v49  ;;  %v2018_v49 = vld [vmem:[%s2591_s7 + $0x70] sm:$0xff]  }
 0x1a9   :  { %1771 = vmatpush3.bf16.msra.mxu1 %v1989_v43  ;;  %1879 = vmatprep.subr.bf16.mxu0 %v2083_v0  ;;  %v2013_v43 = vld [vmem:[%s2591_s7 + $0x20] sm:$0xff]  }
 0x1aa   :  { %1772 = vmatprep.subr.bf16.mxu1 %v1990_v44  ;;  %v2014_v44 = vld [vmem:[%s2591_s7 + $0xa8] sm:$0xff]  }
 0x1ac   :  { %1880 = vmatpush3.bf16.msra.mxu0 %v1997_v52  ;;  %v2021_v52 = vld [vmem:[%s2591_s7 + $0x78] sm:$0xff]  }
 0x1ad   :  { %1773 = vmatpush3.bf16.msra.mxu1 %v1992_v47  ;;  %1885 = vmatprep.subr.bf16.mxu0 %v2083_v0  ;;  %v2016_v47 = vld [vmem:[%s2591_s7 + $0x28] sm:$0xff]  }
 0x1ae   :  { %1774 = vmatprep.subr.bf16.mxu1 %v1993_v48  ;;  %v2017_v48 = vld [vmem:[%s2591_s7 + $0xb0] sm:$0xff]  }
 0x1b1   :  { %1775 = vmatpush3.bf16.msra.mxu1 %v1995_v50  ;;  %v2019_v50 = vld [vmem:[%s2591_s7 + $0x30] sm:$0xff]  }
 0x1b2   :  { %1776 = vmatprep.subr.bf16.mxu1 %v1996_v51  ;;  %v2020_v51 = vld [vmem:[%s2591_s7 + $0xb8] sm:$0xff]  }
 0x1b5   :  { %1777 = vmatpush3.bf16.msra.mxu1 %v1998_v54  ;;  %v2022_v54 = vld [vmem:[%s2591_s7 + $0x38] sm:$0xff]  }
 0x1b6   :  { %1793 = vmatprep.subr.bf16.mxu1 %v2000_v30 }
 0x262   :  { %v778_v55 = vpop.f32.mrb[8].mxu0 }
 0x263   :  { %v1863_v56 = vpop.f32.mrb[9].mxu0 }
 0x264   :  { %v781_v57 = vpop.f32.mrb[10].mxu0 }
 0x265   :  { %v1864_v58 = vpop.f32.mrb[11].mxu0 }
 0x26b   :  { %v1747_v60 = vpop.f32.mrb[4].mxu1 }
 0x26c   :  { %v1748_v62 = vpop.f32.mrb[5].mxu1 }
 0x26d   :  { %v1749_v63 = vadd.f32 %v1748_v62, %v1747_v60  ;;  %v1750_v1 = vpop.f32.mrb[6].mxu1 }
 0x26e   :  { %v1751_v2 = vpop.f32.mrb[7].mxu1 }
 0x26f   :  { %v738_v3 = vadd.f32 %v1749_v63, %v558_v61  ;;  %v1752_v4 = vadd.f32 %v1751_v2, %v1750_v1 }
 0x271   :  { %v779_v5 = vadd.f32 %v778_v55, %v738_v3  ;;  %v741_v7 = vadd.f32 %v1752_v4, %v558_v61  ;;  %v878_v55 = vld [vmem:[%s2590_s6] sm:$0x3] }
 0x272   :  { %v882_v59 = vrot.slane %v878_v55, %v2347_v46 }
 0x273   :  { %v785_v8 = vmax.f32 %v779_v5, 0.0  ;;  %v782_v9 = vadd.f32 %v781_v57, %v741_v7  ;;  %v1111_v5 = vrot.slane %v878_v55, %v2353_v53 }
 0x275   :  { %v791_v10 = vadd.f32 %v790_v6, %v785_v8  ;;  %v786_v11 = vmax.f32 %v782_v9, 0.0 }
 0x277   :  { %793 = vst [vmem:[#allocation5] sm:$0xff] %v791_v10  ;;  %v792_v12 = vadd.f32 %v790_v6, %v786_v11 }
 0x279   :  { %794 = vst [vmem:[#allocation5 + $0x8] sm:$0xff] %v792_v12 }
 0x27e   :  { %v797_v13 = vld [vmem:[#allocation5 + $0x1] ss:$2 sm:$0x7]  ;;  %v809_v14 = vld [vmem:[#allocation5] ss:$2 sm:$0xf] }
 0x27f   :  { %v799_v15 = vrot.slane %v797_v13, 7  ;;  %810 = vst [vmem:[#allocation6 + $0x8] sm:$0xf] %v809_v14  ;;  %v817_v16 = vld [vmem:[#allocation5 + $0x1] ss:$2 sm:$0xf] }
 0x280   :  { %v804_v17 = vld [vmem:[#allocation5 + $0x9] ss:$2 sm:$0x7]  ;;  %818 = vst [vmem:[#allocation6 + $0x10] sm:$0xf] %v817_v16 }
 0x281   :  { %v819_v18 = vld [vmem:[#allocation5 + $0x9] ss:$2 sm:$0xf]  ;;  %801 = vst [vmem:[#allocation6] sm:$0xe] %v799_v15  ;;  %v806_v19 = vrot.slane %v804_v17, 3 }
 0x282   :  { %v821_v20 = vrot.slane %v819_v18, 4  ;;  %v812_v21 = vld [vmem:[#allocation5 + $0x8] ss:$2 sm:$0xf] }
 0x283   :  { %v814_v22 = vrot.slane %v812_v21, 4  ;;  %808 = vst [vmem:[#allocation6] sm:$0xe0] %v806_v19 }
 0x284   :  { %823 = vst [vmem:[#allocation6 + $0x10] sm:$0xf0] %v821_v20 }
 0x285   :  { %816 = vst [vmem:[#allocation6 + $0x8] sm:$0xf0] %v814_v22  ;;  %v2024_v22 = vld [vmem:[%s2593_s9] sm:$0xff]  }
 0x28a   :  { %v824_v24 = vld [vmem:[#allocation6] sm:$0xff] }
 0x28b   :  { %v826_v23 = vld [vmem:[#allocation6 + $0x10] sm:$0xff]  ;;  %v827_v27 = vpack.c.bf16 %v824_v24, %v824_v24 }
 0x28c   :  { %v825_v25 = vld [vmem:[#allocation6 + $0x8] sm:$0xff]  ;;  %v829_v26 = vpack.c.bf16 %v826_v23, %v826_v23  ;;  %v2026_v24 = vld [vmem:[%s2593_s9 + $0x10] sm:$0xff]  }
 0x28d   :  { %v828_v28 = vpack.c.bf16 %v825_v25, %v825_v25  ;;  %v2025_v23 = vld [vmem:[%s2593_s9 + $0x8] sm:$0xff]   ;;  %v2027_v25 = vld [vmem:[%s2593_s9 + $0x18] sm:$0xff]  }
 0x28e   :  { %1882 = vmatmul.mubr.bf16.vlgmr.msra.gmra.mrb[12].mxu0 %v829_v26  ;;  %v2028_v26 = vld [vmem:[%s2593_s9 + $0x20] sm:$0xff]  }
 0x28f   :  { %1059 = vmatprep.mubr.bf16.mxu1 %v828_v28  ;;  %1901 = vmatprep.mubr.msk.bf16.mxu0 %vm2084_vm8, %v2083_v0  ;;  %v2030_v28 = vld [vmem:[%s2593_s9 + $0x30] sm:$0xff]  }
 0x290   :  { %1060 = vmatmul.mubr.bf16.vlgmr.msra.gmra.mrb[8].mxu1 %v827_v27  ;;  %1886 = vmatpush3.bf16.msra.mxu0 %v1999_v29  ;;  %v2029_v27 = vld [vmem:[%s2593_s9 + $0x28] sm:$0xff]   ;;  %v2031_v29 = vld [vmem:[%s2593_s9 + $0x38] sm:$0xff]  }
 0x291   :  { %1887 = vmatprep.subr.bf16.mxu0 %v2083_v0  ;;  %1794 = vmatpush3.bf16.msra.mxu1 %v2001_v31 }
 0x292   :  { %1795 = vmatprep.subr.bf16.mxu1 %v2003_v33  ;;  %v1193_v33 = vld [vmem:[%s2592_s8] sm:$0x3] }
 0x294   :  { %1888 = vmatpush3.bf16.msra.mxu0 %v2002_v32 }
 0x295   :  { %1889 = vmatprep.subr.bf16.mxu0 %v2083_v0  ;;  %1796 = vmatpush3.bf16.msra.mxu1 %v2004_v34 }
 0x296   :  { %1797 = vmatprep.subr.bf16.mxu1 %v2006_v36  ;;  %v1197_v36 = vrot.slane %v1193_v33, %v2347_v46 }
 0x298   :  { %1890 = vmatpush3.bf16.msra.mxu0 %v2005_v35 }
 0x299   :  { %1891 = vmatprep.subr.bf16.mxu0 %v2083_v0  ;;  %1798 = vmatpush3.bf16.msra.mxu1 %v2007_v37 }
 0x29a   :  { %1799 = vmatprep.subr.bf16.mxu1 %v2009_v39 }
 0x29c   :  { %1892 = vmatpush3.bf16.msra.mxu0 %v2008_v38 }
 0x29d   :  { %1893 = vmatprep.subr.bf16.mxu0 %v2083_v0  ;;  %1800 = vmatpush3.bf16.msra.mxu1 %v2010_v40 }
 0x29e   :  { %1801 = vmatprep.subr.bf16.mxu1 %v2012_v42 }
 0x2a0   :  { %1894 = vmatpush3.bf16.msra.mxu0 %v2011_v41 }
 0x2a1   :  { %1895 = vmatprep.subr.bf16.mxu0 %v2083_v0  ;;  %1802 = vmatpush3.bf16.msra.mxu1 %v2013_v43 }
 0x2a2   :  { %1803 = vmatprep.subr.bf16.mxu1 %v2015_v45 }
 0x2a4   :  { %1896 = vmatpush3.bf16.msra.mxu0 %v2014_v44 }
 0x2a5   :  { %1897 = vmatprep.subr.bf16.mxu0 %v2083_v0  ;;  %1804 = vmatpush3.bf16.msra.mxu1 %v2016_v47 }
 0x2a6   :  { %1805 = vmatprep.subr.bf16.mxu1 %v2018_v49 }
 0x2a8   :  { %1898 = vmatpush3.bf16.msra.mxu0 %v2017_v48 }
 0x2a9   :  { %1899 = vmatprep.subr.bf16.mxu0 %v2083_v0  ;;  %1806 = vmatpush3.bf16.msra.mxu1 %v2019_v50 }
 0x2aa   :  { %1807 = vmatprep.subr.bf16.mxu1 %v2021_v52 }
 0x2ac   :  { %1900 = vmatpush3.bf16.msra.mxu0 %v2020_v51 }
 0x2ad   :  { %1808 = vmatpush3.bf16.msra.mxu1 %v2022_v54 }
 0x2ae   :  { %1905 = vmatprep.subr.bf16.mxu1 %v2083_v0 }
 0x361   :  { %v1101_v56 = vpop.f32.mrb[12].mxu0 }
 0x362   :  { %v1883_v57 = vpop.f32.mrb[13].mxu0 }
 0x363   :  { %v1778_v58 = vpop.f32.mrb[8].mxu1  ;;  %v1104_v60 = vpop.f32.mrb[14].mxu0 }
 0x364   :  { %v1779_v61 = vpop.f32.mrb[9].mxu1  ;;  %v1884_v62 = vpop.f32.mrb[15].mxu0 }
 0x365   :  { %v1780_v63 = vadd.f32 %v1779_v61, %v1778_v58  ;;  %v1781_v1 = vpop.f32.mrb[10].mxu1  ;;  %v1688_v62 = vld [vmem:[%s2594_s10] ss:$0 sm:$0xff] }
 0x366   :  { %v1782_v2 = vpop.f32.mrb[11].mxu1 }
 0x367   :  { %v1062_v3 = vadd.f32 %v1780_v63, %v882_v59 }
 0x369   :  { %v1102_v4 = vadd.f32 %v1101_v56, %v1062_v3 }
 0x36b   :  { %v1107_v6 = vmax.f32 %v1102_v4, 0.0 }
 0x36d   :  { %v1112_v7 = vadd.f32 %v1111_v5, %v1107_v6 }
 0x36f   :  { %1113 = vst [vmem:[#allocation7] sm:$0xff] %v1112_v7 }
 0x376   :  { %v1132_v8 = vld [vmem:[#allocation7 + $0x5] ss:$2 sm:$0x3]  ;;  %v1129_v9 = vld [vmem:[#allocation7 + $0x1] ss:$2 sm:$0x3] }
 0x377   :  { %v1134_v10 = vrot.slane %v1132_v8, 6  ;;  %1130 = vst [vmem:[#allocation8 + $0x8] sm:$0x3] %v1129_v9  ;;  %v1115_v11 = vld [vmem:[#allocation7 + $0x1] sm:$0x1] }
 0x378   :  { %v1118_v12 = vld [vmem:[#allocation7 + $0x5] sm:$0x1]  ;;  %1116 = vst [vmem:[#allocation8 + $0x1] sm:$0x1] %v1115_v11 }
 0x379   :  { %1119 = vst [vmem:[#allocation8 + $0x3] sm:$0x1] %v1118_v12  ;;  %v1120_v13 = vld [vmem:[#allocation7] ss:$2 sm:$0x3] }
 0x37a   :  { %v1123_v14 = vld [vmem:[#allocation7 + $0x4] ss:$2 sm:$0x3]  ;;  %1136 = vst [vmem:[#allocation8 + $0x8] sm:$0xc] %v1134_v10 }
 0x37b   :  { %1121 = vst [vmem:[#allocation8 + $0x4] sm:$0x3] %v1120_v13  ;;  %v1125_v15 = vrot.slane %v1123_v14, 6 }
 0x37d   :  { %1127 = vst [vmem:[#allocation8 + $0x4] sm:$0xc] %v1125_v15 }
 0x381   :  { %v1138_v16 = vld [vmem:[#allocation8 + $0x8] sm:$0xf] }
 0x382   :  { %v1144_v17 = vpack.c.bf16 %v1138_v16, %v1138_v16 }
 0x384   :  { %v1137_v18 = vld [vmem:[#allocation8] sm:$0xff]  ;;  %1902 = vmatmul.mubr.bf16.vlgmr.msra.gmra.mrb[16].mxu0 %v1144_v17 }
 0x385   :  { %v1140_v19 = vcombine.high %v1137_v18, %v1137_v18  ;;  %v1142_v21 = vpack.c.bf16 %v1137_v18, %v1137_v18 }
 0x387   :  { %v1143_v20 = vpack.c.bf16 %v1140_v19, %v1140_v19 }
 0x389   :  { %1374 = vmatprep.mubr.bf16.mxu1 %v1143_v20 }
 0x38a   :  { %1375 = vmatmul.mubr.bf16.vlgmr.msra.gmra.mrb[12].mxu1 %v1142_v21 }
 0x38b   :  { %1921 = vmatprep.mubr.msk.bf16.mxu1 %vm2084_vm8, %v2083_v0  ;;  %1906 = vmatpush3.bf16.msra.mxu1 %v2024_v22 }
 0x38c   :  { %1907 = vmatprep.subr.bf16.mxu1 %v2083_v0 }
 0x38f   :  { %1908 = vmatpush3.bf16.msra.mxu1 %v2025_v23 }
 0x390   :  { %1909 = vmatprep.subr.bf16.mxu1 %v2083_v0 }
 0x393   :  { %1910 = vmatpush3.bf16.msra.mxu1 %v2026_v24 }
 0x394   :  { %1911 = vmatprep.subr.bf16.mxu1 %v2083_v0 }
 0x397   :  { %1912 = vmatpush3.bf16.msra.mxu1 %v2027_v25 }
 0x398   :  { %1913 = vmatprep.subr.bf16.mxu1 %v2083_v0 }
 0x39b   :  { %1914 = vmatpush3.bf16.msra.mxu1 %v2028_v26 }
 0x39c   :  { %1915 = vmatprep.subr.bf16.mxu1 %v2083_v0 }
 0x39f   :  { %1916 = vmatpush3.bf16.msra.mxu1 %v2029_v27 }
 0x3a0   :  { %1917 = vmatprep.subr.bf16.mxu1 %v2083_v0 }
 0x3a3   :  { %1918 = vmatpush3.bf16.msra.mxu1 %v2030_v28 }
 0x3a4   :  { %1919 = vmatprep.subr.bf16.mxu1 %v2083_v0  ;;  %v1426_v0 = vrot.slane %v1193_v33, %v2353_v53 }
 0x3a7   :  { %1920 = vmatpush3.bf16.msra.mxu1 %v2031_v29 }
 0x457   :  { %v1416_v30 = vpop.f32.mrb[16].mxu0 }
 0x458   :  { %v1903_v31 = vpop.f32.mrb[17].mxu0 }
 0x459   :  { %v1419_v32 = vpop.f32.mrb[18].mxu0 }
 0x45a   :  { %v1904_v34 = vpop.f32.mrb[19].mxu0 }
 0x45d   :  { %v1809_v35 = vpop.f32.mrb[12].mxu1 }
 0x45e   :  { %v1810_v37 = vpop.f32.mrb[13].mxu1 }
 0x45f   :  { %v1811_v38 = vadd.f32 %v1810_v37, %v1809_v35  ;;  %v1812_v39 = vpop.f32.mrb[14].mxu1 }
 0x460   :  { %v1813_v40 = vpop.f32.mrb[15].mxu1 }
 0x461   :  { %v1377_v41 = vadd.f32 %v1811_v38, %v1197_v36 }
 0x463   :  { %v1417_v42 = vadd.f32 %v1416_v30, %v1377_v41 }
 0x465   :  { %v1422_v43 = vmax.f32 %v1417_v42, 0.0 }
 0x467   :  { %v1427_v44 = vadd.f32 %v1426_v0, %v1422_v43 }
 0x469   :  { %v1429_v45 = vsel %vm1428_vm9, %v1427_v44, 0.0  ;;  %v1437_v47 = vrot.slane %v1427_v44, 2 }
 0x46a   :  { %v1430_v48 = vrot.slane %v1429_v45, 4 }
 0x46b   :  { %v1439_v49 = vsel %vm1428_vm9, %v1437_v47, 0.0 }
 0x46c   :  { %v1431_v50 = vadd.f32 %v1430_v48, %v1429_v45  ;;  %v1440_v51 = vrot.slane %v1439_v49, 4 }
 0x46e   :  { %v1432_v52 = vrot.slane %v1431_v50, 2  ;;  %v1441_v54 = vadd.f32 %v1440_v51, %v1439_v49 }
 0x470   :  { %v1433_v46 = vadd.f32 %v1432_v52, %v1431_v50  ;;  %v1442_v55 = vrot.slane %v1441_v54, 2 }
 0x472   :  { %v1434_v56 = vrot.slane %v1433_v46, 1  ;;  %v1443_v57 = vadd.f32 %v1442_v55, %v1441_v54 }
 0x474   :  { %v1444_v58 = vrot.slane %v1443_v57, 1  ;;  %v1435_v59 = vadd.f32 %v1434_v56, %v1433_v46 }
 0x476   :  { %v1445_v60 = vadd.f32 %v1444_v58, %v1443_v57 }
 0x478   :  { %v1446_v53 = vsel %vm61_vm2, %v1435_v59, %v1445_v60 }
 0x479   :  { %v1447_v61 = vpack.c.bf16 %v1446_v53, %v1446_v53 }
 0x47b   :  { %1922 = vmatmul.mubr.bf16.vlgmr.msra.gmra.mrb[16].mxu1 %v1447_v61 }
 0x54e   :  { %v1553_v63 = vpop.f32.mrb[16].mxu1 }
 0x54f   :  { %v1554_v1 = vadd.f32 %v1688_v62, %v1553_v63  ;;  %v1923_v2 = vpop.f32.mrb[17].mxu1 }
 0x550   :  { %v1556_v3 = vpop.f32.mrb[18].mxu1 }
 0x551   :  { %v1924_v4 = vpop.f32.mrb[19].mxu1  ;;  %1560 = vst.msk [vmem:[#allocation12] sm:$0x3] %vm1559_vm10, %v1554_v1 }
 0x552   :  { %2065 = shalt.err (!%p2062_p12)
}
 0x553   :  { %s2066_s10 = scalar_lea.hbm %s2595_s11, 32 }
 0x554   :  { %p2067_p13 = scmp.ne.s32.totalorder %s2595_s11, %s2066_s10  ;;  %p2070_p0 = scmp.lt.u32.totalorder %s2066_s10, %s2595_s11 }
 0x556   :  { %p2072_p1 = pnand %p2070_p0, %p2067_p13 }
 0x558   :  { %2075 = shalt.err (!%p2072_p1)
}
 0x559   :  { %1570 = dma.vmem_to_hbm [thread:$0]  %s1568_s15, 32, %s2595_s11, [#allocation11]  }
 0x55a   :  { %2078 = dma.done.wait [#allocation11], 32  }
 0x55b   :  { %2079 = vsyncadd [#allocation11], 4294967264 }
 0x55c   :  { %1574 = vsyncpa [#allocation10], 1 }
 0x55d   :  { %1575 = vsyncpa [#allocation11], 1 }

</bundles_post_ra>
